<compile_context>
chip_gen: v7x
topology: tpu7x:2x2x1
jax: 0.10.0
libtpu: 0.0.40
codegen_flags: <defaults>
</compile_context>

<pallas_src>
import functools

import numpy as np
import jax
import jax.numpy as jnp
from jax.experimental import pallas as pl
from jax.experimental.pallas import tpu as pltpu


# ----------------------------------------------------------------------------
# One-time, host-side operator folding (numpy; call once per weight set).
# ----------------------------------------------------------------------------
def _bilinear_matrix(in_size: int, out_size: int) -> np.ndarray:
    """(out_size, in_size) matrix reproducing nn.Upsample(mode='bilinear',
    align_corners=False) along one axis (PyTorch half-pixel convention)."""
    m = np.zeros((out_size, in_size), dtype=np.float32)
    scale = in_size / out_size
    for i in range(out_size):
        src = max((i + 0.5) * scale - 0.5, 0.0)
        lo = min(int(np.floor(src)), in_size - 1)
        hi = min(lo + 1, in_size - 1)
        frac = src - lo
        m[i, lo] += 1.0 - frac
        m[i, hi] += frac
    return m


def _build_tap_matrices(H: int, W: int) -> np.ndarray:
    """A[t] maps flattened input (H*W) -> flattened upsampled+padded+shifted
    patch (2H*2W) for conv tap t = dh*3 + dw (3x3 kernel, zero pad 1)."""
    P, Q = 2 * H, 2 * W
    mh = _bilinear_matrix(H, P)
    mw = _bilinear_matrix(W, Q)
    mh_pad = np.zeros((P + 2, H), np.float32)
    mh_pad[1:-1] = mh
    mw_pad = np.zeros((Q + 2, W), np.float32)
    mw_pad[1:-1] = mw
    A = np.zeros((9, P * Q, H * W), np.float32)
    for dh in range(3):
        for dw in range(3):
            A[dh * 3 + dw] = np.kron(mh_pad[dh:dh + P, :], mw_pad[dw:dw + Q, :])
    return A


def fold_upblock2d_operator(conv_w, conv_b, bn_gamma, bn_beta, bn_mean, bn_var,
                            H, W, eps=1e-5):
    """Fold upsample + zero-pad + 3x3 conv + BN(eval) scale into a dense operator.

    Returns (M_bf16 of shape (H*W*Cin, 2H*2W*Cout), shift_f32 of shape (1, 2H*2W*Cout)).
    Call ONCE per weight set and reuse across forward calls.
    """
    conv_w = np.asarray(conv_w, np.float32)
    conv_b = np.asarray(conv_b, np.float32)
    gamma = np.asarray(bn_gamma, np.float32)
    beta = np.asarray(bn_beta, np.float32)
    mean = np.asarray(bn_mean, np.float32)
    var = np.asarray(bn_var, np.float32)

    Cout, Cin = conv_w.shape[0], conv_w.shape[1]
    P, Q = 2 * H, 2 * W

    A = _build_tap_matrices(H, W)                                    # (9, PQ, HW)
    Wt = np.transpose(conv_w, (2, 3, 1, 0)).reshape(9, Cin, Cout)    # per-tap (Cin, Cout)
    scale = gamma / np.sqrt(var + eps)                               # BN (eval) scale
    Wt_s = Wt * scale[None, None, :]                                 # fold BN scale into W

    # M[k*Cin+cin, p*Cout+c] = sum_t A[t,p,k] * Wt_s[t,cin,c]
    M = np.einsum('tpk,tic->kipc', A, Wt_s).reshape(H * W * Cin, P * Q * Cout)
    shift = beta + (conv_b - mean) * scale                           # fused bias + BN shift
    shift_full = np.broadcast_to(shift, (P * Q, Cout)).reshape(1, P * Q * Cout)

    # bf16 operator: halves the dominant HBM->VMEM DMA; matmul still accumulates in f32.
    return (jnp.asarray(M, dtype=jnp.bfloat16),
            jnp.asarray(np.ascontiguousarray(shift_full), dtype=jnp.float32))


# ----------------------------------------------------------------------------
# Pallas kernel: one MXU matmul + fused shift + LeakyReLU epilogue per grid step.
# ----------------------------------------------------------------------------
def _upblock_kernel(x_ref, m_ref, shift_ref, o_ref):
    # x_ref:     (Bb, H*W*Cin)        bf16 batch of flattened images
    # m_ref:     (H*W*Cin, PQ*Cout)   bf16 fused upsample+pad+conv+BN-scale operator
    # shift_ref: (1, PQ*Cout)         f32 fused conv-bias + BN shift
    # o_ref:     (Bb, PQ*Cout)        f32 lane-dense output block
    y = jnp.dot(x_ref[...], m_ref[...], preferred_element_type=jnp.float32)
    y = y + shift_ref[...]
    o_ref[...] = jnp.maximum(y, 0.2 * y)            # LeakyReLU(0.2), no compare/select


def _num_grid_steps(batch: int) -> int:
    """2 grid steps only where there are really 2 TensorCores (v7x); else 1."""
    try:
        kind = jax.devices()[0].device_kind.lower()
    except Exception:
        kind = ""
    n_tc = 2 if "v7" in kind else 1
    return 2 if (n_tc >= 2 and batch >= 2) else 1


@functools.partial(jax.jit, static_argnames=("grid_steps",))
def upblock2d_forward(x_ncdhw, M, shift_full, *, grid_steps=1):
    """Forward pass of UpBlock2d(reshape_3d=True, input_2d=False) given folded params."""
    N, Cin, D, H, W = x_ncdhw.shape
    P, Q = 2 * H, 2 * W
    HWC = H * W * Cin
    PQC = shift_full.shape[-1]
    Cout = PQC // (P * Q)
    Bp = D * N

    G = grid_steps
    Bb = ((pl.cdiv(Bp, G) + 7) // 8) * 8     # pad to full sublane tiles / unmasked stores
    Bp_pad = G * Bb

    # torch.cat(torch.unbind(x, dim=2), dim=0): flattened image index = d*N + n,
    # channels-last flatten so that x_vec index = (h*W + w)*Cin + cin.
    x2d = jnp.transpose(x_ncdhw, (2, 0, 3, 4, 1)).reshape(Bp, HWC).astype(jnp.bfloat16)
    x2d = jnp.pad(x2d, ((0, Bp_pad - Bp), (0, 0)))
    x3 = x2d.reshape(G, Bb, HWC)

    out3 = pl.pallas_call(
        _upblock_kernel,
        out_shape=jax.ShapeDtypeStruct((G, Bb, PQC), jnp.float32),
        grid_spec=pltpu.PrefetchScalarGridSpec(
            num_scalar_prefetch=0,
            grid=(G,),
            in_specs=[
                pl.BlockSpec((pl.Squeezed(), Bb, HWC), lambda g: (g, 0, 0)),
                # Grid-invariant operands (constant index maps -> fetched once).
                pl.BlockSpec((HWC, PQC), lambda g: (0, 0)),
                pl.BlockSpec((1, PQC), lambda g: (0, 0)),
            ],
            out_specs=pl.BlockSpec((pl.Squeezed(), Bb, PQC), lambda g: (g, 0, 0)),
        ),
        compiler_params=pltpu.CompilerParams(
            dimension_semantics=(("parallel",) if G > 1 else ("arbitrary",)),
            vmem_limit_bytes=32 * 1024 * 1024,
        ),
    )(x3, M, shift_full)

    out_flat = out3.reshape(Bp_pad, PQC)[:Bp]
    # reshape_3d=True: cat(out.unsqueeze(2).chunk(5, 0), 2) -> (N, Cout, D, 2H, 2W)
    out_ncdhw = jnp.transpose(out_flat.reshape(D, N, P, Q, Cout), (1, 4, 0, 2, 3))
    return out_ncdhw


if __name__ == "__main__":
    N, Cin, Cout, D, H, W = 2, 4, 8, 5, 8, 8

    key = jax.random.PRNGKey(0)
    k1, k2, k3, k4, k5, k6, k7 = jax.random.split(key, 7)
    x = jax.random.normal(k1, (N, Cin, D, H, W), dtype=jnp.float32)
    conv_w = 0.1 * jax.random.normal(k2, (Cout, Cin, 3, 3), dtype=jnp.float32)
    conv_b = 0.1 * jax.random.normal(k3, (Cout,), dtype=jnp.float32)
    bn_gamma = 1.0 + 0.1 * jax.random.normal(k4, (Cout,), dtype=jnp.float32)
    bn_beta = 0.1 * jax.random.normal(k5, (Cout,), dtype=jnp.float32)
    bn_mean = 0.1 * jax.random.normal(k6, (Cout,), dtype=jnp.float32)
    bn_var = 1.0 + jax.random.uniform(k7, (Cout,), dtype=jnp.float32)

    # One-time folding (per weight set); reused across every forward call.
    M, shift_full = fold_upblock2d_operator(
        conv_w, conv_b, bn_gamma, bn_beta, bn_mean, bn_var, H, W)

    G = _num_grid_steps(D * N)
    out = upblock2d_forward(x, M, shift_full, grid_steps=G)
    out = jax.block_until_ready(out)
    assert out.shape == (N, Cout, D, 2 * H, 2 * W), out.shape

    # Pure-JAX f32 reference of the same math (upsample+pad+conv via taps, bias, BN, LeakyReLU).
    # TODO(synk): add a PyTorch golden test for Upsample/Conv2d/BatchNorm2d numerics.
    P, Q = 2 * H, 2 * W
    Bp = D * N
    A = jnp.asarray(_build_tap_matrices(H, W))
    Wt = jnp.transpose(conv_w, (2, 3, 1, 0)).reshape(9, Cin, Cout)
    x_img = jnp.transpose(x, (2, 0, 3, 4, 1)).reshape(Bp, H * W, Cin)
    ref = jnp.einsum('tpk,bki,tic->bpc', A, x_img, Wt, precision='highest') + conv_b
    scale = bn_gamma / jnp.sqrt(bn_var + 1e-5)
    ref = (ref - bn_mean) * scale + bn_beta
    ref = jnp.where(ref > 0.0, ref, 0.2 * ref)
    ref_ncdhw = jnp.transpose(ref.reshape(D, N, P, Q, Cout), (1, 4, 0, 2, 3))

    # Tolerance loosened vs. the f32 version: activations and the fused operator travel
    # in bf16 (f32 accumulation), so errors land around 1e-2.
    np.testing.assert_allclose(np.asarray(out), np.asarray(ref_ncdhw),
                               rtol=5e-2, atol=5e-2)

    print("KERNEL_OK")
</pallas_src>

<mosaic_0001>
module attributes {stable_mosaic.version = 11 : i64} {
  func.func @_upblock_kernel(%arg0: i32, %arg1: memref<1x16x256xbf16, #tpu.memory_space<vmem>>, %arg2: memref<256x2048xbf16, #tpu.memory_space<vmem>>, %arg3: memref<1x2048xf32, #tpu.memory_space<vmem>>, %arg4: memref<1x16x2048xf32, #tpu.memory_space<vmem>>) attributes {dimension_semantics = [#tpu.dimension_semantics<arbitrary>], iteration_bounds = array<i64: 1>, scalar_prefetch = 0 : i64, scratch_operands = 0 : i64, tpu.core_type = #tpu.core_type<tc>, window_params = [{transform_indices = @transform_0, window_bounds = array<i64: 1, 16, 256>}, {pipeline_mode = #tpu.pipeline_mode<synchronous>, transform_indices = @transform_1, window_bounds = array<i64: 256, 2048>}, {pipeline_mode = #tpu.pipeline_mode<synchronous>, transform_indices = @transform_2, window_bounds = array<i64: 1, 2048>}, {transform_indices = @transform_3, window_bounds = array<i64: 1, 16, 2048>}]} {
    %c0 = arith.constant 0 : index
    %c0_0 = arith.constant 0 : index
    %c0_1 = arith.constant 0 : index
    %0 = vector.load %arg1[%c0, %c0_0, %c0_1] : memref<1x16x256xbf16, #tpu.memory_space<vmem>>, vector<1x16x256xbf16>
    %1 = vector.shape_cast %0 : vector<1x16x256xbf16> to vector<16x256xbf16>
    %c0_2 = arith.constant 0 : index
    %c0_3 = arith.constant 0 : index
    %2 = vector.load %arg2[%c0_2, %c0_3] : memref<256x2048xbf16, #tpu.memory_space<vmem>>, vector<256x2048xbf16>
    %cst = arith.constant dense<0.000000e+00> : vector<16x2048xf32>
    %3 = tpu.matmul %1, %2, %cst {dimension_numbers = #tpu.dot_dimension_numbers<[1], [0], [0], [1], [0, 0, 1, 1], [], []>} : vector<16x256xbf16>, vector<256x2048xbf16>, vector<16x2048xf32> -> vector<16x2048xf32>
    %c0_4 = arith.constant 0 : index
    %c0_5 = arith.constant 0 : index
    %4 = vector.load %arg3[%c0_4, %c0_5] : memref<1x2048xf32, #tpu.memory_space<vmem>>, vector<1x2048xf32>
    %5 = vector.broadcast %4 : vector<1x2048xf32> to vector<16x2048xf32>
    %6 = arith.addf %3, %5 : vector<16x2048xf32>
    %cst_6 = arith.constant 2.000000e-01 : f32
    %7 = vector.broadcast %cst_6 : f32 to vector<16x2048xf32>
    %8 = arith.mulf %7, %6 : vector<16x2048xf32>
    %9 = arith.maximumf %6, %8 : vector<16x2048xf32>
    %c0_7 = arith.constant 0 : index
    %c0_8 = arith.constant 0 : index
    %c0_9 = arith.constant 0 : index
    %10 = vector.load %arg4[%c0_7, %c0_8, %c0_9] : memref<1x16x2048xf32, #tpu.memory_space<vmem>>, vector<1x16x2048xf32>
    %11 = vector.shape_cast %10 : vector<1x16x2048xf32> to vector<16x2048xf32>
    %12 = vector.shape_cast %9 : vector<16x2048xf32> to vector<1x16x2048xf32>
    tpu.vector_store %arg4[%c0_7, %c0_8, %c0_9], %12 {strides = array<i32>} : memref<1x16x2048xf32, #tpu.memory_space<vmem>>, vector<1x16x2048xf32>,
    return
  }
  func.func @transform_0(%arg0: i32) -> (i32, i32, i32) {
    %c0_i32 = arith.constant 0 : i32
    %c0_i32_0 = arith.constant 0 : i32
    %c0_i32_1 = arith.constant 0 : i32
    return %arg0, %c0_i32, %c0_i32_0 : i32, i32, i32
  }
  func.func @transform_1(%arg0: i32) -> (i32, i32) {
    %c0_i32 = arith.constant 0 : i32
    %c0_i32_0 = arith.constant 0 : i32
    %c0_i32_1 = arith.constant 0 : i32
    return %c0_i32, %c0_i32_0 : i32, i32
  }
  func.func @transform_2(%arg0: i32) -> (i32, i32) {
    %c0_i32 = arith.constant 0 : i32
    %c0_i32_0 = arith.constant 0 : i32
    %c0_i32_1 = arith.constant 0 : i32
    return %c0_i32, %c0_i32_0 : i32, i32
  }
  func.func @transform_3(%arg0: i32) -> (i32, i32, i32) {
    %c0_i32 = arith.constant 0 : i32
    %c0_i32_0 = arith.constant 0 : i32
    %c0_i32_1 = arith.constant 0 : i32
    return %arg0, %c0_i32, %c0_i32_0 : i32, i32, i32
  }
}

</mosaic_0001>

<bundles_post_ra>
// kernel: upblock2d_forward.1
= control target key start
LH: loop header
LB: loop body
LE: loop exit
PB: predicated region body
PF: predicated region fallthrough
CT: control target
= control target key end

     0   :  { %8 = vsyncpa [#allocation3], 0  ;;  %s2647_s0 = inlined_call_operand.vmem [shape: bf16[1,16,256], index: 0, kind: input, shape index: {}]   ;;  %s2648_s1 = inlined_call_operand.hbm [shape: bf16[256,2048], index: 1, kind: input, shape index: {}]   ;;  %s2649_s2 = inlined_call_operand.hbm [shape: f32[1,2048], index: 2, kind: input, shape index: {}]   ;;  %s2650_s3 = inlined_call_operand.vmem [shape: f32[1,16,2048], index: 3, kind: output, shape index: {}]  }
   0x1   :  { %9 = vsyncpa [#allocation5], 0  ;;  %s2433_s12 = smov [#allocation2]   ;;  %s2385_s16 = scalar_lea.hbm %s2648_s1, 32768 }
   0x2   :  { %s17_s13 = sshll.u32 %s2433_s12, 4  ;;  %p2386_p0 = scmp.ne.s32.totalorder %s2648_s1, %s2385_s16  ;;  %s18_s13 = int_to_ptr.vmem [resolvable:$true] %s17_s13 }
   0x3   :  { %p2389_p1 = scmp.lt.u32.totalorder %s2385_s16, %s2648_s1 }
   0x5   :  { %p2391_p2 = pnand %p2389_p1, %p2386_p0 }
   0x7   :  { %2394 = shalt.err (!%p2391_p2)
}
   0x8   :  { %s2395_s21 = scalar_lea.vmem %s18_s13, 32768  ;;  %p2400_p4 = scmp.lt.s32.totalorder %s18_s13, %s18_s13 }
   0x9   :  { %p2396_p3 = scmp.ne.s32.totalorder %s18_s13, %s2395_s21  ;;  %p2401_p5 = scmp.lt.s32.totalorder %s2395_s21, %s2395_s21 }
   0xb   :  { %p2402_p6 = por %p2401_p5, %p2400_p4 }
   0xd   :  { %p2403_p7 = pnand %p2402_p6, %p2396_p3 }
   0xf   :  { %2406 = shalt.err (!%p2403_p7)
}
  0x10   :  { %s2434_s22 = smov 1024   ;;  %s2435_s23 = smov 64  }
  0x11   :  { %23 = dma.hbm_to_vmem [thread:$0]  %s2648_s1, 32768, %s18_s13, [#allocation3], %s2434_s22, %s2434_s22, %s2435_s23  }
  0x12   :  { %s2436_s26 = smov [#allocation4]   ;;  %s2407_s30 = scalar_lea.hbm %s2649_s2, 256 }
  0x13   :  { %s30_s27 = sshll.u32 %s2436_s26, 4  ;;  %p2408_p8 = scmp.ne.s32.totalorder %s2649_s2, %s2407_s30  ;;  %s31_s27 = int_to_ptr.vmem [resolvable:$true] %s30_s27 }
  0x14   :  { %p2411_p9 = scmp.lt.u32.totalorder %s2407_s30, %s2649_s2 }
  0x16   :  { %p2413_p10 = pnand %p2411_p9, %p2408_p8 }
  0x18   :  { %2416 = shalt.err (!%p2413_p10)
}
  0x19   :  { %s2417_s8 = scalar_lea.vmem %s31_s27, 256  ;;  %p2422_p12 = scmp.lt.s32.totalorder %s31_s27, %s31_s27 }
  0x1a   :  { %p2418_p11 = scmp.ne.s32.totalorder %s31_s27, %s2417_s8  ;;  %p2423_p13 = scmp.lt.s32.totalorder %s2417_s8, %s2417_s8 }
  0x1c   :  { %p2424_p0 = por %p2423_p13, %p2422_p12 }
  0x1e   :  { %p2425_p1 = pnand %p2424_p0, %p2418_p11 }
  0x20   :  { %2428 = shalt.err (!%p2425_p1)
}
  0x21   :  { %33 = dma.hbm_to_vmem [thread:$0]  %s2649_s2, 256, %s31_s27, [#allocation5]  }
  0x22   :  { %2429 = dma.done.wait [#allocation3], 32768  }
  0x23   :  { %2430 = vsyncadd [#allocation3], 4294934528 }
  0x24   :  { %2431 = dma.done.wait [#allocation5], 256  }
  0x25   :  { %2432 = vsyncadd [#allocation5], 4294967040  ;;  %v42_v0 = vld [vmem:[#allocation2] sm:$0xff]  ;;  %v43_v2 = vld [vmem:[#allocation2 + $0x8] sm:$0xff] }
  0x26   :  { %v50_v1 = vld [vmem:[#allocation2 + $0x40] sm:$0xff]  ;;  %v51_v4 = vld [vmem:[#allocation2 + $0x48] sm:$0xff] }
  0x27   :  { %v2121_v3 = vcombine.high %v42_v0, %v50_v1  ;;  %v2120_v5 = vcombine.low %v42_v0, %v50_v1  ;;  %v58_v6 = vld [vmem:[#allocation2 + $0x80] sm:$0xff]  ;;  %v2123_v8 = vcombine.high %v43_v2, %v51_v4  ;;  %v2122_v9 = vcombine.low %v43_v2, %v51_v4  ;;  %v59_v11 = vld [vmem:[#allocation2 + $0x88] sm:$0xff] }
  0x28   :  { %v66_v7 = vld [vmem:[#allocation2 + $0xc0] sm:$0xff]  ;;  %v67_v12 = vld [vmem:[#allocation2 + $0xc8] sm:$0xff] }
  0x29   :  { %v2137_v10 = vcombine.high %v58_v6, %v66_v7  ;;  %v74_v13 = vld [vmem:[#allocation2 + $0x100] sm:$0xff]  ;;  %1672 = vmatprep.subr.bf16.mxu0 %v2121_v3  ;;  %v2139_v14 = vcombine.high %v59_v11, %v67_v12  ;;  %v75_v16 = vld [vmem:[#allocation2 + $0x108] sm:$0xff]  ;;  %1715 = vmatprep.subr.bf16.mxu1 %v2123_v8  ;;  %v2136_v18 = vcombine.low %v58_v6, %v66_v7 }
  0x2a   :  { %v82_v15 = vld [vmem:[#allocation2 + $0x140] sm:$0xff]  ;;  %v83_v17 = vld [vmem:[#allocation2 + $0x148] sm:$0xff]  ;;  %1673 = vmatpush1.bf16.msra.mxu0 %v2120_v5  ;;  %1716 = vmatpush1.bf16.msra.mxu1 %v2122_v9  ;;  %v2138_v19 = vcombine.low %v59_v11, %v67_v12 }
  0x2b   :  { %1674 = vmatprep.subr.bf16.mxu0 %v2137_v10  ;;  %v2153_v20 = vcombine.high %v74_v13, %v82_v15  ;;  %1717 = vmatprep.subr.bf16.mxu1 %v2139_v14  ;;  %v2155_v21 = vcombine.high %v75_v16, %v83_v17  ;;  %v90_v22 = vld [vmem:[#allocation2 + $0x180] sm:$0xff]  ;;  %v91_v24 = vld [vmem:[#allocation2 + $0x188] sm:$0xff]  ;;  %v2152_v26 = vcombine.low %v74_v13, %v82_v15 }
  0x2c   :  { %v98_v23 = vld [vmem:[#allocation2 + $0x1c0] sm:$0xff]  ;;  %v99_v25 = vld [vmem:[#allocation2 + $0x1c8] sm:$0xff]  ;;  %v2154_v27 = vcombine.low %v75_v16, %v83_v17 }
  0x2d   :  { %v2169_v28 = vcombine.high %v90_v22, %v98_v23  ;;  %v2171_v29 = vcombine.high %v91_v24, %v99_v25  ;;  %v106_v30 = vld [vmem:[#allocation2 + $0x200] sm:$0xff]  ;;  %v107_v32 = vld [vmem:[#allocation2 + $0x208] sm:$0xff]  ;;  %v2168_v34 = vcombine.low %v90_v22, %v98_v23  ;;  %v2170_v35 = vcombine.low %v91_v24, %v99_v25 }
  0x2e   :  { %1675 = vmatpush1.bf16.msra.mxu0 %v2136_v18  ;;  %1718 = vmatpush1.bf16.msra.mxu1 %v2138_v19  ;;  %v114_v31 = vld [vmem:[#allocation2 + $0x240] sm:$0xff]  ;;  %v115_v33 = vld [vmem:[#allocation2 + $0x248] sm:$0xff] }
  0x2f   :  { %1676 = vmatprep.subr.bf16.mxu0 %v2153_v20  ;;  %1719 = vmatprep.subr.bf16.mxu1 %v2155_v21  ;;  %v2185_v36 = vcombine.high %v106_v30, %v114_v31  ;;  %v2187_v37 = vcombine.high %v107_v32, %v115_v33  ;;  %v122_v38 = vld [vmem:[#allocation2 + $0x280] sm:$0xff]  ;;  %v123_v40 = vld [vmem:[#allocation2 + $0x288] sm:$0xff]  ;;  %v2184_v42 = vcombine.low %v106_v30, %v114_v31 }
  0x30   :  { %v130_v39 = vld [vmem:[#allocation2 + $0x2c0] sm:$0xff]  ;;  %v131_v41 = vld [vmem:[#allocation2 + $0x2c8] sm:$0xff]  ;;  %v2186_v43 = vcombine.low %v107_v32, %v115_v33 }
  0x31   :  { %v2201_v44 = vcombine.high %v122_v38, %v130_v39  ;;  %v2203_v45 = vcombine.high %v123_v40, %v131_v41  ;;  %v138_v46 = vld [vmem:[#allocation2 + $0x300] sm:$0xff]  ;;  %v139_v48 = vld [vmem:[#allocation2 + $0x308] sm:$0xff]  ;;  %v2200_v50 = vcombine.low %v122_v38, %v130_v39  ;;  %v2202_v51 = vcombine.low %v123_v40, %v131_v41 }
  0x32   :  { %1677 = vmatpush1.bf16.msra.mxu0 %v2152_v26  ;;  %1720 = vmatpush1.bf16.msra.mxu1 %v2154_v27  ;;  %v146_v47 = vld [vmem:[#allocation2 + $0x340] sm:$0xff]  ;;  %v147_v49 = vld [vmem:[#allocation2 + $0x348] sm:$0xff] }
  0x33   :  { %1678 = vmatprep.subr.bf16.mxu0 %v2169_v28  ;;  %1721 = vmatprep.subr.bf16.mxu1 %v2171_v29  ;;  %v2217_v52 = vcombine.high %v138_v46, %v146_v47  ;;  %v2219_v53 = vcombine.high %v139_v48, %v147_v49  ;;  %v154_v54 = vld [vmem:[#allocation2 + $0x380] sm:$0xff]  ;;  %v155_v57 = vld [vmem:[#allocation2 + $0x388] sm:$0xff]  ;;  %v2216_v59 = vcombine.low %v138_v46, %v146_v47 }
  0x34   :  { %v162_v55 = vld [vmem:[#allocation2 + $0x3c0] sm:$0xff]  ;;  %v163_v58 = vld [vmem:[#allocation2 + $0x3c8] sm:$0xff]  ;;  %v2218_v60 = vcombine.low %v139_v48, %v147_v49 }
  0x35   :  { %v2484_v56 = vld [vmem:[%s2647_s0 + $0x4] ss:$8 sps:$4 sm:$0xff]   ;;  %v2233_v61 = vcombine.high %v154_v54, %v162_v55  ;;  %v2235_v62 = vcombine.high %v155_v57, %v163_v58  ;;  %v2232_v3 = vcombine.low %v154_v54, %v162_v55  ;;  %v2234_v4 = vcombine.low %v155_v57, %v163_v58 }
  0x36   :  { %1679 = vmatpush1.bf16.msra.mxu0 %v2168_v34  ;;  %1722 = vmatpush1.bf16.msra.mxu1 %v2170_v35  ;;  %v170_v63 = vld [vmem:[#allocation2 + $0x400] sm:$0xff]  ;;  %v171_v1 = vld [vmem:[#allocation2 + $0x408] sm:$0xff] }
  0x37   :  { %1680 = vmatprep.subr.bf16.mxu0 %v2185_v36  ;;  %1723 = vmatprep.subr.bf16.mxu1 %v2187_v37  ;;  %v178_v0 = vld [vmem:[#allocation2 + $0x440] sm:$0xff]  ;;  %v179_v2 = vld [vmem:[#allocation2 + $0x448] sm:$0xff] }
  0x38   :  { %1704 = vmatprep.mubr.bf16.mxu0 %v2484_v56  ;;  %1747 = vmatprep.mubr.bf16.mxu1 %v2484_v56  ;;  %v2249_v5 = vcombine.high %v170_v63, %v178_v0  ;;  %v2251_v6 = vcombine.high %v171_v1, %v179_v2  ;;  %v186_v7 = vld [vmem:[#allocation2 + $0x480] sm:$0xff]  ;;  %v187_v9 = vld [vmem:[#allocation2 + $0x488] sm:$0xff]  ;;  %v2248_v11 = vcombine.low %v170_v63, %v178_v0  ;;  %v44_v0 = vld [vmem:[#allocation2 + $0x10] sm:$0xff] }
  0x39   :  { %v194_v8 = vld [vmem:[#allocation2 + $0x4c0] sm:$0xff]  ;;  %v195_v10 = vld [vmem:[#allocation2 + $0x4c8] sm:$0xff]  ;;  %v2250_v12 = vcombine.low %v171_v1, %v179_v2  ;;  %v52_v1 = vld [vmem:[#allocation2 + $0x50] sm:$0xff] }
  0x3a   :  { %1681 = vmatpush1.bf16.msra.mxu0 %v2184_v42  ;;  %1724 = vmatpush1.bf16.msra.mxu1 %v2186_v43  ;;  %v2265_v13 = vcombine.high %v186_v7, %v194_v8  ;;  %v2267_v14 = vcombine.high %v187_v9, %v195_v10  ;;  %v202_v15 = vld [vmem:[#allocation2 + $0x500] sm:$0xff]  ;;  %v203_v17 = vld [vmem:[#allocation2 + $0x508] sm:$0xff]  ;;  %v2264_v19 = vcombine.low %v186_v7, %v194_v8  ;;  %v45_v2 = vld [vmem:[#allocation2 + $0x18] sm:$0xff] }
  0x3b   :  { %1682 = vmatprep.subr.bf16.mxu0 %v2201_v44  ;;  %1725 = vmatprep.subr.bf16.mxu1 %v2203_v45  ;;  %v210_v16 = vld [vmem:[#allocation2 + $0x540] sm:$0xff]  ;;  %v211_v18 = vld [vmem:[#allocation2 + $0x548] sm:$0xff]  ;;  %v2266_v20 = vcombine.low %v187_v9, %v195_v10  ;;  %v60_v8 = vld [vmem:[#allocation2 + $0x90] sm:$0xff] }
  0x3c   :  { %v2281_v21 = vcombine.high %v202_v15, %v210_v16  ;;  %v2283_v22 = vcombine.high %v203_v17, %v211_v18  ;;  %v218_v23 = vld [vmem:[#allocation2 + $0x580] sm:$0xff]  ;;  %v219_v25 = vld [vmem:[#allocation2 + $0x588] sm:$0xff]  ;;  %v2280_v27 = vcombine.low %v202_v15, %v210_v16  ;;  %v2282_v28 = vcombine.low %v203_v17, %v211_v18  ;;  %v68_v9 = vld [vmem:[#allocation2 + $0xd0] sm:$0xff] }
  0x3d   :  { %v226_v24 = vld [vmem:[#allocation2 + $0x5c0] sm:$0xff]  ;;  %v227_v26 = vld [vmem:[#allocation2 + $0x5c8] sm:$0xff]  ;;  %v2141_v15 = vcombine.high %v60_v8, %v68_v9  ;;  %v76_v17 = vld [vmem:[#allocation2 + $0x110] sm:$0xff] }
  0x3e   :  { %1683 = vmatpush1.bf16.msra.mxu0 %v2200_v50  ;;  %1726 = vmatpush1.bf16.msra.mxu1 %v2202_v51  ;;  %v2297_v29 = vcombine.high %v218_v23, %v226_v24  ;;  %v2299_v30 = vcombine.high %v219_v25, %v227_v26  ;;  %v234_v31 = vld [vmem:[#allocation2 + $0x600] sm:$0xff]  ;;  %v235_v33 = vld [vmem:[#allocation2 + $0x608] sm:$0xff]  ;;  %v2296_v35 = vcombine.low %v218_v23, %v226_v24  ;;  %v84_v18 = vld [vmem:[#allocation2 + $0x150] sm:$0xff] }
  0x3f   :  { %1684 = vmatprep.subr.bf16.mxu0 %v2217_v52  ;;  %1727 = vmatprep.subr.bf16.mxu1 %v2219_v53  ;;  %v242_v32 = vld [vmem:[#allocation2 + $0x640] sm:$0xff]  ;;  %v243_v34 = vld [vmem:[#allocation2 + $0x648] sm:$0xff]  ;;  %v2298_v36 = vcombine.low %v219_v25, %v227_v26  ;;  %v2157_v23 = vcombine.high %v76_v17, %v84_v18  ;;  %v92_v25 = vld [vmem:[#allocation2 + $0x190] sm:$0xff] }
  0x40   :  { %v2313_v37 = vcombine.high %v234_v31, %v242_v32  ;;  %v2315_v38 = vcombine.high %v235_v33, %v243_v34  ;;  %v250_v39 = vld [vmem:[#allocation2 + $0x680] sm:$0xff]  ;;  %v251_v41 = vld [vmem:[#allocation2 + $0x688] sm:$0xff]  ;;  %v2312_v43 = vcombine.low %v234_v31, %v242_v32  ;;  %v2314_v44 = vcombine.low %v235_v33, %v243_v34  ;;  %v100_v26 = vld [vmem:[#allocation2 + $0x1d0] sm:$0xff] }
  0x41   :  { %v258_v40 = vld [vmem:[#allocation2 + $0x6c0] sm:$0xff]  ;;  %v259_v42 = vld [vmem:[#allocation2 + $0x6c8] sm:$0xff]  ;;  %v2173_v31 = vcombine.high %v92_v25, %v100_v26  ;;  %v108_v33 = vld [vmem:[#allocation2 + $0x210] sm:$0xff] }
  0x42   :  { %1685 = vmatpush1.bf16.msra.mxu0 %v2216_v59  ;;  %1728 = vmatpush1.bf16.msra.mxu1 %v2218_v60  ;;  %v2329_v45 = vcombine.high %v250_v39, %v258_v40  ;;  %v2331_v46 = vcombine.high %v251_v41, %v259_v42  ;;  %v266_v47 = vld [vmem:[#allocation2 + $0x700] sm:$0xff]  ;;  %v267_v49 = vld [vmem:[#allocation2 + $0x708] sm:$0xff]  ;;  %v2328_v51 = vcombine.low %v250_v39, %v258_v40  ;;  %v116_v34 = vld [vmem:[#allocation2 + $0x250] sm:$0xff] }
  0x43   :  { %1686 = vmatprep.subr.bf16.mxu0 %v2233_v61  ;;  %1729 = vmatprep.subr.bf16.mxu1 %v2235_v62  ;;  %v274_v48 = vld [vmem:[#allocation2 + $0x740] sm:$0xff]  ;;  %v275_v50 = vld [vmem:[#allocation2 + $0x748] sm:$0xff]  ;;  %v2330_v52 = vcombine.low %v251_v41, %v259_v42  ;;  %v2189_v39 = vcombine.high %v108_v33, %v116_v34  ;;  %v124_v41 = vld [vmem:[#allocation2 + $0x290] sm:$0xff] }
  0x44   :  { %v2345_v53 = vcombine.high %v266_v47, %v274_v48  ;;  %v2347_v54 = vcombine.high %v267_v49, %v275_v50  ;;  %v282_v55 = vld [vmem:[#allocation2 + $0x780] sm:$0xff]  ;;  %v283_v58 = vld [vmem:[#allocation2 + $0x788] sm:$0xff]  ;;  %v2344_v60 = vcombine.low %v266_v47, %v274_v48  ;;  %v2346_v61 = vcombine.low %v267_v49, %v275_v50  ;;  %v132_v42 = vld [vmem:[#allocation2 + $0x2d0] sm:$0xff] }
  0x45   :  { %v290_v57 = vld [vmem:[#allocation2 + $0x7c0] sm:$0xff]  ;;  %v291_v59 = vld [vmem:[#allocation2 + $0x7c8] sm:$0xff]  ;;  %v2205_v47 = vcombine.high %v124_v41, %v132_v42  ;;  %v140_v49 = vld [vmem:[#allocation2 + $0x310] sm:$0xff] }
  0x46   :  { %1687 = vmatpush1.bf16.msra.mxu0 %v2232_v3  ;;  %1730 = vmatpush1.bf16.msra.mxu1 %v2234_v4  ;;  %v2361_v62 = vcombine.high %v282_v55, %v290_v57  ;;  %v2363_v63 = vcombine.high %v283_v58, %v291_v59  ;;  %v53_v3 = vld [vmem:[#allocation2 + $0x58] sm:$0xff]  ;;  %v2360_v4 = vcombine.low %v282_v55, %v290_v57  ;;  %v2491_v10 = vld [vmem:[%s2647_s0] ss:$8 sps:$4 sm:$0xff]   ;;  %v148_v50 = vld [vmem:[#allocation2 + $0x350] sm:$0xff] }
  0x47   :  { %1688 = vmatprep.subr.bf16.mxu0 %v2249_v5  ;;  %1731 = vmatprep.subr.bf16.mxu1 %v2251_v6  ;;  %v2362_v5 = vcombine.low %v283_v58, %v291_v59  ;;  %v2125_v6 = vcombine.high %v44_v0, %v52_v1  ;;  %v2127_v7 = vcombine.high %v45_v2, %v53_v3  ;;  %v156_v58 = vld [vmem:[#allocation2 + $0x390] sm:$0xff] }
  0x48   :  { %v2221_v55 = vcombine.high %v140_v49, %v148_v50  ;;  %v164_v59 = vld [vmem:[#allocation2 + $0x3d0] sm:$0xff] }
  0x4a   :  { %1689 = vmatpush1.bf16.msra.mxu0 %v2248_v11  ;;  %1732 = vmatpush1.bf16.msra.mxu1 %v2250_v12  ;;  %v61_v11 = vld [vmem:[#allocation2 + $0x98] sm:$0xff] }
  0x4b   :  { %1690 = vmatprep.subr.bf16.mxu0 %v2265_v13  ;;  %1733 = vmatprep.subr.bf16.mxu1 %v2267_v14  ;;  %v69_v12 = vld [vmem:[#allocation2 + $0xd8] sm:$0xff]  ;;  %v2124_v13 = vcombine.low %v44_v0, %v52_v1  ;;  %v2126_v14 = vcombine.low %v45_v2, %v53_v3  ;;  %v2237_v0 = vcombine.high %v156_v58, %v164_v59  ;;  %v172_v2 = vld [vmem:[#allocation2 + $0x410] sm:$0xff] }
  0x4c   :  { %v2143_v16 = vcombine.high %v61_v11, %v69_v12  ;;  %v180_v3 = vld [vmem:[#allocation2 + $0x450] sm:$0xff] }
  0x4e   :  { %1691 = vmatpush1.bf16.msra.mxu0 %v2264_v19  ;;  %1734 = vmatpush1.bf16.msra.mxu1 %v2266_v20  ;;  %v77_v19 = vld [vmem:[#allocation2 + $0x118] sm:$0xff] }
  0x4f   :  { %1692 = vmatprep.subr.bf16.mxu0 %v2281_v21  ;;  %1735 = vmatprep.subr.bf16.mxu1 %v2283_v22  ;;  %v85_v20 = vld [vmem:[#allocation2 + $0x158] sm:$0xff]  ;;  %v2140_v21 = vcombine.low %v60_v8, %v68_v9  ;;  %v2142_v22 = vcombine.low %v61_v11, %v69_v12  ;;  %v2253_v8 = vcombine.high %v172_v2, %v180_v3  ;;  %v188_v11 = vld [vmem:[#allocation2 + $0x490] sm:$0xff] }
  0x50   :  { %v2159_v24 = vcombine.high %v77_v19, %v85_v20  ;;  %v196_v12 = vld [vmem:[#allocation2 + $0x4d0] sm:$0xff] }
  0x52   :  { %1693 = vmatpush1.bf16.msra.mxu0 %v2280_v27  ;;  %1736 = vmatpush1.bf16.msra.mxu1 %v2282_v28  ;;  %v93_v27 = vld [vmem:[#allocation2 + $0x198] sm:$0xff] }
  0x53   :  { %1694 = vmatprep.subr.bf16.mxu0 %v2297_v29  ;;  %1737 = vmatprep.subr.bf16.mxu1 %v2299_v30  ;;  %v101_v28 = vld [vmem:[#allocation2 + $0x1d8] sm:$0xff]  ;;  %v2156_v29 = vcombine.low %v76_v17, %v84_v18  ;;  %v2158_v30 = vcombine.low %v77_v19, %v85_v20  ;;  %v2269_v17 = vcombine.high %v188_v11, %v196_v12  ;;  %v204_v19 = vld [vmem:[#allocation2 + $0x510] sm:$0xff] }
  0x54   :  { %v2175_v32 = vcombine.high %v93_v27, %v101_v28  ;;  %v212_v20 = vld [vmem:[#allocation2 + $0x550] sm:$0xff] }
  0x56   :  { %1695 = vmatpush1.bf16.msra.mxu0 %v2296_v35  ;;  %1738 = vmatpush1.bf16.msra.mxu1 %v2298_v36  ;;  %v109_v35 = vld [vmem:[#allocation2 + $0x218] sm:$0xff] }
  0x57   :  { %1696 = vmatprep.subr.bf16.mxu0 %v2313_v37  ;;  %1739 = vmatprep.subr.bf16.mxu1 %v2315_v38  ;;  %v117_v36 = vld [vmem:[#allocation2 + $0x258] sm:$0xff]  ;;  %v2172_v37 = vcombine.low %v92_v25, %v100_v26  ;;  %v2174_v38 = vcombine.low %v93_v27, %v101_v28  ;;  %v2285_v25 = vcombine.high %v204_v19, %v212_v20  ;;  %v220_v27 = vld [vmem:[#allocation2 + $0x590] sm:$0xff] }
  0x58   :  { %v2191_v40 = vcombine.high %v109_v35, %v117_v36  ;;  %v228_v28 = vld [vmem:[#allocation2 + $0x5d0] sm:$0xff] }
  0x5a   :  { %1697 = vmatpush1.bf16.msra.mxu0 %v2312_v43  ;;  %1740 = vmatpush1.bf16.msra.mxu1 %v2314_v44  ;;  %v125_v43 = vld [vmem:[#allocation2 + $0x298] sm:$0xff] }
  0x5b   :  { %1698 = vmatprep.subr.bf16.mxu0 %v2329_v45  ;;  %1741 = vmatprep.subr.bf16.mxu1 %v2331_v46  ;;  %v133_v44 = vld [vmem:[#allocation2 + $0x2d8] sm:$0xff]  ;;  %v2188_v45 = vcombine.low %v108_v33, %v116_v34  ;;  %v2190_v46 = vcombine.low %v109_v35, %v117_v36  ;;  %v2301_v33 = vcombine.high %v220_v27, %v228_v28  ;;  %v236_v35 = vld [vmem:[#allocation2 + $0x610] sm:$0xff] }
  0x5c   :  { %v2207_v48 = vcombine.high %v125_v43, %v133_v44  ;;  %v244_v36 = vld [vmem:[#allocation2 + $0x650] sm:$0xff] }
  0x5e   :  { %1699 = vmatpush1.bf16.msra.mxu0 %v2328_v51  ;;  %1742 = vmatpush1.bf16.msra.mxu1 %v2330_v52  ;;  %v141_v51 = vld [vmem:[#allocation2 + $0x318] sm:$0xff] }
  0x5f   :  { %1700 = vmatprep.subr.bf16.mxu0 %v2345_v53  ;;  %1743 = vmatprep.subr.bf16.mxu1 %v2347_v54  ;;  %v149_v52 = vld [vmem:[#allocation2 + $0x358] sm:$0xff]  ;;  %v2204_v53 = vcombine.low %v124_v41, %v132_v42  ;;  %v2206_v54 = vcombine.low %v125_v43, %v133_v44  ;;  %v2317_v41 = vcombine.high %v236_v35, %v244_v36  ;;  %v252_v43 = vld [vmem:[#allocation2 + $0x690] sm:$0xff] }
  0x60   :  { %v2223_v57 = vcombine.high %v141_v51, %v149_v52  ;;  %v260_v44 = vld [vmem:[#allocation2 + $0x6d0] sm:$0xff] }
  0x62   :  { %1701 = vmatpush1.bf16.msra.mxu0 %v2344_v60  ;;  %1744 = vmatpush1.bf16.msra.mxu1 %v2346_v61  ;;  %v157_v60 = vld [vmem:[#allocation2 + $0x398] sm:$0xff] }
  0x63   :  { %1702 = vmatprep.subr.bf16.mxu0 %v2361_v62  ;;  %1745 = vmatprep.subr.bf16.mxu1 %v2363_v63  ;;  %v165_v61 = vld [vmem:[#allocation2 + $0x3d8] sm:$0xff]  ;;  %v2220_v62 = vcombine.low %v140_v49, %v148_v50  ;;  %v2222_v63 = vcombine.low %v141_v51, %v149_v52  ;;  %v2333_v49 = vcombine.high %v252_v43, %v260_v44  ;;  %v268_v51 = vld [vmem:[#allocation2 + $0x710] sm:$0xff] }
  0x64   :  { %v2239_v1 = vcombine.high %v157_v60, %v165_v61  ;;  %v276_v52 = vld [vmem:[#allocation2 + $0x750] sm:$0xff] }
  0x66   :  { %1703 = vmatpush1.bf16.msra.mxu0 %v2360_v4  ;;  %1746 = vmatpush1.bf16.msra.mxu1 %v2362_v5  ;;  %v173_v4 = vld [vmem:[#allocation2 + $0x418] sm:$0xff] }
  0x67   :  { %1758 = vmatprep.subr.bf16.mxu0 %v2125_v6  ;;  %1801 = vmatprep.subr.bf16.mxu1 %v2127_v7  ;;  %v181_v5 = vld [vmem:[#allocation2 + $0x458] sm:$0xff]  ;;  %v2236_v6 = vcombine.low %v156_v58, %v164_v59  ;;  %v2238_v7 = vcombine.low %v157_v60, %v165_v61  ;;  %v2349_v58 = vcombine.high %v268_v51, %v276_v52  ;;  %v284_v60 = vld [vmem:[#allocation2 + $0x790] sm:$0xff] }
  0x68   :  { %v2255_v9 = vcombine.high %v173_v4, %v181_v5  ;;  %v292_v61 = vld [vmem:[#allocation2 + $0x7d0] sm:$0xff] }
  0x69   :  { %1705 = vmatmul.mubr.bf16.vlgmr.msra.gmra.mrb[0].mxu0 %v2491_v10  ;;  %1748 = vmatmul.mubr.bf16.vlgmr.msra.gmra.mrb[0].mxu1 %v2491_v10 }
  0x6a   :  { %1759 = vmatpush1.bf16.msra.mxu0 %v2124_v13  ;;  %1802 = vmatpush1.bf16.msra.mxu1 %v2126_v14  ;;  %v189_v13 = vld [vmem:[#allocation2 + $0x498] sm:$0xff] }
  0x6b   :  { %1760 = vmatprep.subr.bf16.mxu0 %v2141_v15  ;;  %1803 = vmatprep.subr.bf16.mxu1 %v2143_v16  ;;  %v197_v14 = vld [vmem:[#allocation2 + $0x4d8] sm:$0xff]  ;;  %v2252_v15 = vcombine.low %v172_v2, %v180_v3  ;;  %v2254_v16 = vcombine.low %v173_v4, %v181_v5  ;;  %v2365_v2 = vcombine.high %v284_v60, %v292_v61  ;;  %v46_v4 = vld [vmem:[#allocation2 + $0x20] sm:$0xff] }
  0x6c   :  { %1790 = vmatprep.mubr.bf16.mxu0 %v2484_v56  ;;  %1833 = vmatprep.mubr.bf16.mxu1 %v2484_v56  ;;  %v2271_v18 = vcombine.high %v189_v13, %v197_v14  ;;  %v54_v5 = vld [vmem:[#allocation2 + $0x60] sm:$0xff] }
  0x6e   :  { %1761 = vmatpush1.bf16.msra.mxu0 %v2140_v21  ;;  %1804 = vmatpush1.bf16.msra.mxu1 %v2142_v22  ;;  %v205_v21 = vld [vmem:[#allocation2 + $0x518] sm:$0xff] }
  0x6f   :  { %1762 = vmatprep.subr.bf16.mxu0 %v2157_v23  ;;  %1805 = vmatprep.subr.bf16.mxu1 %v2159_v24  ;;  %v213_v22 = vld [vmem:[#allocation2 + $0x558] sm:$0xff]  ;;  %v2268_v23 = vcombine.low %v188_v11, %v196_v12  ;;  %v2270_v24 = vcombine.low %v189_v13, %v197_v14  ;;  %v2129_v11 = vcombine.high %v46_v4, %v54_v5  ;;  %v62_v13 = vld [vmem:[#allocation2 + $0xa0] sm:$0xff] }
  0x70   :  { %v2287_v26 = vcombine.high %v205_v21, %v213_v22  ;;  %v70_v14 = vld [vmem:[#allocation2 + $0xe0] sm:$0xff] }
  0x72   :  { %1763 = vmatpush1.bf16.msra.mxu0 %v2156_v29  ;;  %1806 = vmatpush1.bf16.msra.mxu1 %v2158_v30  ;;  %v221_v29 = vld [vmem:[#allocation2 + $0x598] sm:$0xff] }
  0x73   :  { %1764 = vmatprep.subr.bf16.mxu0 %v2173_v31  ;;  %1807 = vmatprep.subr.bf16.mxu1 %v2175_v32  ;;  %v229_v30 = vld [vmem:[#allocation2 + $0x5d8] sm:$0xff]  ;;  %v2284_v31 = vcombine.low %v204_v19, %v212_v20  ;;  %v2286_v32 = vcombine.low %v205_v21, %v213_v22  ;;  %v2145_v19 = vcombine.high %v62_v13, %v70_v14  ;;  %v78_v21 = vld [vmem:[#allocation2 + $0x120] sm:$0xff] }
  0x74   :  { %v2303_v34 = vcombine.high %v221_v29, %v229_v30  ;;  %v86_v22 = vld [vmem:[#allocation2 + $0x160] sm:$0xff] }
  0x76   :  { %1765 = vmatpush1.bf16.msra.mxu0 %v2172_v37  ;;  %1808 = vmatpush1.bf16.msra.mxu1 %v2174_v38  ;;  %v237_v37 = vld [vmem:[#allocation2 + $0x618] sm:$0xff] }
  0x77   :  { %1766 = vmatprep.subr.bf16.mxu0 %v2189_v39  ;;  %1809 = vmatprep.subr.bf16.mxu1 %v2191_v40  ;;  %v245_v38 = vld [vmem:[#allocation2 + $0x658] sm:$0xff]  ;;  %v2300_v39 = vcombine.low %v220_v27, %v228_v28  ;;  %v2302_v40 = vcombine.low %v221_v29, %v229_v30  ;;  %v2161_v27 = vcombine.high %v78_v21, %v86_v22  ;;  %v94_v29 = vld [vmem:[#allocation2 + $0x1a0] sm:$0xff] }
  0x78   :  { %v2319_v42 = vcombine.high %v237_v37, %v245_v38  ;;  %v102_v30 = vld [vmem:[#allocation2 + $0x1e0] sm:$0xff] }
  0x7a   :  { %1767 = vmatpush1.bf16.msra.mxu0 %v2188_v45  ;;  %1810 = vmatpush1.bf16.msra.mxu1 %v2190_v46  ;;  %v253_v45 = vld [vmem:[#allocation2 + $0x698] sm:$0xff] }
  0x7b   :  { %1768 = vmatprep.subr.bf16.mxu0 %v2205_v47  ;;  %1811 = vmatprep.subr.bf16.mxu1 %v2207_v48  ;;  %v261_v46 = vld [vmem:[#allocation2 + $0x6d8] sm:$0xff]  ;;  %v2316_v47 = vcombine.low %v236_v35, %v244_v36  ;;  %v2318_v48 = vcombine.low %v237_v37, %v245_v38  ;;  %v2177_v35 = vcombine.high %v94_v29, %v102_v30  ;;  %v110_v37 = vld [vmem:[#allocation2 + $0x220] sm:$0xff] }
  0x7c   :  { %v2335_v50 = vcombine.high %v253_v45, %v261_v46  ;;  %v118_v38 = vld [vmem:[#allocation2 + $0x260] sm:$0xff] }
  0x7e   :  { %1769 = vmatpush1.bf16.msra.mxu0 %v2204_v53  ;;  %1812 = vmatpush1.bf16.msra.mxu1 %v2206_v54  ;;  %v269_v53 = vld [vmem:[#allocation2 + $0x718] sm:$0xff] }
  0x7f   :  { %1770 = vmatprep.subr.bf16.mxu0 %v2221_v55  ;;  %1813 = vmatprep.subr.bf16.mxu1 %v2223_v57  ;;  %v277_v54 = vld [vmem:[#allocation2 + $0x758] sm:$0xff]  ;;  %v2332_v55 = vcombine.low %v252_v43, %v260_v44  ;;  %v2334_v57 = vcombine.low %v253_v45, %v261_v46  ;;  %v2193_v43 = vcombine.high %v110_v37, %v118_v38  ;;  %v126_v44 = vld [vmem:[#allocation2 + $0x2a0] sm:$0xff]  ;;  %v127_v46 = vld [vmem:[#allocation2 + $0x2a8] sm:$0xff] }
  0x80   :  { %v2351_v59 = vcombine.high %v269_v53, %v277_v54  ;;  %v134_v45 = vld [vmem:[#allocation2 + $0x2e0] sm:$0xff] }
  0x82   :  { %1771 = vmatpush1.bf16.msra.mxu0 %v2220_v62  ;;  %1814 = vmatpush1.bf16.msra.mxu1 %v2222_v63  ;;  %v285_v62 = vld [vmem:[#allocation2 + $0x798] sm:$0xff] }
  0x83   :  { %1772 = vmatprep.subr.bf16.mxu0 %v2237_v0  ;;  %1815 = vmatprep.subr.bf16.mxu1 %v2239_v1  ;;  %v293_v63 = vld [vmem:[#allocation2 + $0x7d8] sm:$0xff]  ;;  %v2348_v0 = vcombine.low %v268_v51, %v276_v52  ;;  %v2350_v1 = vcombine.low %v269_v53, %v277_v54  ;;  %v142_v52 = vld [vmem:[#allocation2 + $0x320] sm:$0xff]  ;;  %v143_v54 = vld [vmem:[#allocation2 + $0x328] sm:$0xff] }
  0x84   :  { %v2367_v3 = vcombine.high %v285_v62, %v293_v63  ;;  %v150_v53 = vld [vmem:[#allocation2 + $0x360] sm:$0xff] }
  0x86   :  { %1773 = vmatpush1.bf16.msra.mxu0 %v2236_v6  ;;  %1816 = vmatpush1.bf16.msra.mxu1 %v2238_v7  ;;  %v47_v6 = vld [vmem:[#allocation2 + $0x28] sm:$0xff] }
  0x87   :  { %1774 = vmatprep.subr.bf16.mxu0 %v2253_v8  ;;  %1817 = vmatprep.subr.bf16.mxu1 %v2255_v9  ;;  %v55_v7 = vld [vmem:[#allocation2 + $0x68] sm:$0xff]  ;;  %v2364_v8 = vcombine.low %v284_v60, %v292_v61  ;;  %v2366_v9 = vcombine.low %v285_v62, %v293_v63  ;;  %v158_v61 = vld [vmem:[#allocation2 + $0x3a0] sm:$0xff] }
  0x88   :  { %v2131_v12 = vcombine.high %v47_v6, %v55_v7  ;;  %v166_v62 = vld [vmem:[#allocation2 + $0x3e0] sm:$0xff]  ;;  %v159_v63 = vld [vmem:[#allocation2 + $0x3a8] sm:$0xff] }
  0x8a   :  { %1775 = vmatpush1.bf16.msra.mxu0 %v2252_v15  ;;  %1818 = vmatpush1.bf16.msra.mxu1 %v2254_v16  ;;  %v63_v15 = vld [vmem:[#allocation2 + $0xa8] sm:$0xff] }
  0x8b   :  { %1776 = vmatprep.subr.bf16.mxu0 %v2269_v17  ;;  %1819 = vmatprep.subr.bf16.mxu1 %v2271_v18  ;;  %v71_v16 = vld [vmem:[#allocation2 + $0xe8] sm:$0xff]  ;;  %v2128_v17 = vcombine.low %v46_v4, %v54_v5  ;;  %v2130_v18 = vcombine.low %v47_v6, %v55_v7  ;;  %v174_v5 = vld [vmem:[#allocation2 + $0x420] sm:$0xff] }
  0x8c   :  { %v2147_v20 = vcombine.high %v63_v15, %v71_v16  ;;  %v182_v6 = vld [vmem:[#allocation2 + $0x460] sm:$0xff]  ;;  %v175_v7 = vld [vmem:[#allocation2 + $0x428] sm:$0xff] }
  0x8e   :  { %1777 = vmatpush1.bf16.msra.mxu0 %v2268_v23  ;;  %1820 = vmatpush1.bf16.msra.mxu1 %v2270_v24  ;;  %v79_v23 = vld [vmem:[#allocation2 + $0x128] sm:$0xff] }
  0x8f   :  { %1778 = vmatprep.subr.bf16.mxu0 %v2285_v25  ;;  %1821 = vmatprep.subr.bf16.mxu1 %v2287_v26  ;;  %v87_v24 = vld [vmem:[#allocation2 + $0x168] sm:$0xff]  ;;  %v2144_v25 = vcombine.low %v62_v13, %v70_v14  ;;  %v2146_v26 = vcombine.low %v63_v15, %v71_v16  ;;  %v190_v14 = vld [vmem:[#allocation2 + $0x4a0] sm:$0xff] }
  0x90   :  { %v2163_v28 = vcombine.high %v79_v23, %v87_v24  ;;  %v198_v15 = vld [vmem:[#allocation2 + $0x4e0] sm:$0xff]  ;;  %v191_v16 = vld [vmem:[#allocation2 + $0x4a8] sm:$0xff] }
  0x92   :  { %1779 = vmatpush1.bf16.msra.mxu0 %v2284_v31  ;;  %1822 = vmatpush1.bf16.msra.mxu1 %v2286_v32  ;;  %v95_v31 = vld [vmem:[#allocation2 + $0x1a8] sm:$0xff] }
  0x93   :  { %1780 = vmatprep.subr.bf16.mxu0 %v2301_v33  ;;  %1823 = vmatprep.subr.bf16.mxu1 %v2303_v34  ;;  %v103_v32 = vld [vmem:[#allocation2 + $0x1e8] sm:$0xff]  ;;  %v2160_v33 = vcombine.low %v78_v21, %v86_v22  ;;  %v2162_v34 = vcombine.low %v79_v23, %v87_v24  ;;  %v206_v22 = vld [vmem:[#allocation2 + $0x520] sm:$0xff] }
  0x94   :  { %v2179_v36 = vcombine.high %v95_v31, %v103_v32  ;;  %v214_v23 = vld [vmem:[#allocation2 + $0x560] sm:$0xff]  ;;  %v207_v24 = vld [vmem:[#allocation2 + $0x528] sm:$0xff] }
  0x96   :  { %1781 = vmatpush1.bf16.msra.mxu0 %v2300_v39  ;;  %1824 = vmatpush1.bf16.msra.mxu1 %v2302_v40  ;;  %v111_v39 = vld [vmem:[#allocation2 + $0x228] sm:$0xff] }
  0x97   :  { %1782 = vmatprep.subr.bf16.mxu0 %v2317_v41  ;;  %1825 = vmatprep.subr.bf16.mxu1 %v2319_v42  ;;  %v119_v40 = vld [vmem:[#allocation2 + $0x268] sm:$0xff]  ;;  %v2176_v41 = vcombine.low %v94_v29, %v102_v30  ;;  %v2178_v42 = vcombine.low %v95_v31, %v103_v32  ;;  %v222_v30 = vld [vmem:[#allocation2 + $0x5a0] sm:$0xff] }
  0x98   :  { %v230_v31 = vld [vmem:[#allocation2 + $0x5e0] sm:$0xff]  ;;  %v223_v32 = vld [vmem:[#allocation2 + $0x5a8] sm:$0xff] }
  0x9a   :  { %1783 = vmatpush1.bf16.msra.mxu0 %v2316_v47  ;;  %1826 = vmatpush1.bf16.msra.mxu1 %v2318_v48  ;;  %v135_v47 = vld [vmem:[#allocation2 + $0x2e8] sm:$0xff]  ;;  %v2192_v48 = vcombine.low %v110_v37, %v118_v38  ;;  %v238_v38 = vld [vmem:[#allocation2 + $0x620] sm:$0xff] }
  0x9b   :  { %1784 = vmatprep.subr.bf16.mxu0 %v2333_v49  ;;  %1827 = vmatprep.subr.bf16.mxu1 %v2335_v50  ;;  %v2194_v49 = vcombine.low %v111_v39, %v119_v40  ;;  %v2209_v50 = vcombine.high %v126_v44, %v134_v45  ;;  %v2211_v51 = vcombine.high %v127_v46, %v135_v47 }
  0x9e   :  { %1785 = vmatpush1.bf16.msra.mxu0 %v2332_v55  ;;  %1828 = vmatpush1.bf16.msra.mxu1 %v2334_v57  ;;  %v151_v55 = vld [vmem:[#allocation2 + $0x368] sm:$0xff]  ;;  %v2208_v57 = vcombine.low %v126_v44, %v134_v45  ;;  %v254_v45 = vld [vmem:[#allocation2 + $0x6a0] sm:$0xff] }
  0x9f   :  { %1786 = vmatprep.subr.bf16.mxu0 %v2349_v58  ;;  %1829 = vmatprep.subr.bf16.mxu1 %v2351_v59  ;;  %v2210_v58 = vcombine.low %v127_v46, %v135_v47  ;;  %v2225_v59 = vcombine.high %v142_v52, %v150_v53  ;;  %v2227_v60 = vcombine.high %v143_v54, %v151_v55  ;;  %v262_v46 = vld [vmem:[#allocation2 + $0x6e0] sm:$0xff]  ;;  %v255_v47 = vld [vmem:[#allocation2 + $0x6a8] sm:$0xff] }
  0xa2   :  { %1787 = vmatpush1.bf16.msra.mxu0 %v2348_v0  ;;  %1830 = vmatpush1.bf16.msra.mxu1 %v2350_v1  ;;  %v167_v0 = vld [vmem:[#allocation2 + $0x3e8] sm:$0xff]  ;;  %v2224_v1 = vcombine.low %v142_v52, %v150_v53  ;;  %v270_v53 = vld [vmem:[#allocation2 + $0x720] sm:$0xff] }
  0xa3   :  { %1788 = vmatprep.subr.bf16.mxu0 %v2365_v2  ;;  %1831 = vmatprep.subr.bf16.mxu1 %v2367_v3  ;;  %v2226_v2 = vcombine.low %v143_v54, %v151_v55  ;;  %v2241_v3 = vcombine.high %v158_v61, %v166_v62  ;;  %v2243_v4 = vcombine.high %v159_v63, %v167_v0  ;;  %v278_v54 = vld [vmem:[#allocation2 + $0x760] sm:$0xff]  ;;  %v271_v55 = vld [vmem:[#allocation2 + $0x728] sm:$0xff] }
  0xa6   :  { %1789 = vmatpush1.bf16.msra.mxu0 %v2364_v8  ;;  %1832 = vmatpush1.bf16.msra.mxu1 %v2366_v9  ;;  %v183_v8 = vld [vmem:[#allocation2 + $0x468] sm:$0xff]  ;;  %v2240_v9 = vcombine.low %v158_v61, %v166_v62  ;;  %v286_v62 = vld [vmem:[#allocation2 + $0x7a0] sm:$0xff] }
  0xa7   :  { %1844 = vmatprep.subr.bf16.mxu0 %v2129_v11  ;;  %1887 = vmatprep.subr.bf16.mxu1 %v2131_v12  ;;  %v2242_v11 = vcombine.low %v159_v63, %v167_v0  ;;  %v2257_v12 = vcombine.high %v174_v5, %v182_v6  ;;  %v2259_v13 = vcombine.high %v175_v7, %v183_v8  ;;  %v294_v63 = vld [vmem:[#allocation2 + $0x7e0] sm:$0xff]  ;;  %v287_v0 = vld [vmem:[#allocation2 + $0x7a8] sm:$0xff] }
  0xa9   :  { %1791 = vmatmul.mubr.bf16.vlgmr.msra.gmra.mrb[4].mxu0 %v2491_v10  ;;  %1834 = vmatmul.mubr.bf16.vlgmr.msra.gmra.mrb[4].mxu1 %v2491_v10 }
  0xaa   :  { %1845 = vmatpush1.bf16.msra.mxu0 %v2128_v17  ;;  %1888 = vmatpush1.bf16.msra.mxu1 %v2130_v18  ;;  %v199_v17 = vld [vmem:[#allocation2 + $0x4e8] sm:$0xff]  ;;  %v2256_v18 = vcombine.low %v174_v5, %v182_v6  ;;  %v48_v6 = vld [vmem:[#allocation2 + $0x30] sm:$0xff] }
  0xab   :  { %1846 = vmatprep.subr.bf16.mxu0 %v2145_v19  ;;  %1889 = vmatprep.subr.bf16.mxu1 %v2147_v20  ;;  %v2258_v19 = vcombine.low %v175_v7, %v183_v8  ;;  %v2273_v20 = vcombine.high %v190_v14, %v198_v15  ;;  %v2275_v21 = vcombine.high %v191_v16, %v199_v17  ;;  %v56_v7 = vld [vmem:[#allocation2 + $0x70] sm:$0xff]  ;;  %v49_v8 = vld [vmem:[#allocation2 + $0x38] sm:$0xff] }
  0xac   :  { %1876 = vmatprep.mubr.bf16.mxu0 %v2484_v56  ;;  %1919 = vmatprep.mubr.bf16.mxu1 %v2484_v56  ;;  %v2195_v56 = vcombine.high %v111_v39, %v119_v40  ;;  %v246_v39 = vld [vmem:[#allocation2 + $0x660] sm:$0xff]  ;;  %v239_v40 = vld [vmem:[#allocation2 + $0x628] sm:$0xff] }
  0xae   :  { %1847 = vmatpush1.bf16.msra.mxu0 %v2144_v25  ;;  %1890 = vmatpush1.bf16.msra.mxu1 %v2146_v26  ;;  %v215_v25 = vld [vmem:[#allocation2 + $0x568] sm:$0xff]  ;;  %v2272_v26 = vcombine.low %v190_v14, %v198_v15  ;;  %v64_v15 = vld [vmem:[#allocation2 + $0xb0] sm:$0xff] }
  0xaf   :  { %1848 = vmatprep.subr.bf16.mxu0 %v2161_v27  ;;  %1891 = vmatprep.subr.bf16.mxu1 %v2163_v28  ;;  %v2274_v27 = vcombine.low %v191_v16, %v199_v17  ;;  %v2289_v28 = vcombine.high %v206_v22, %v214_v23  ;;  %v2291_v29 = vcombine.high %v207_v24, %v215_v25  ;;  %v72_v16 = vld [vmem:[#allocation2 + $0xf0] sm:$0xff]  ;;  %v65_v17 = vld [vmem:[#allocation2 + $0xb8] sm:$0xff] }
  0xb2   :  { %1849 = vmatpush1.bf16.msra.mxu0 %v2160_v33  ;;  %1892 = vmatpush1.bf16.msra.mxu1 %v2162_v34  ;;  %v231_v33 = vld [vmem:[#allocation2 + $0x5e8] sm:$0xff]  ;;  %v2288_v34 = vcombine.low %v206_v22, %v214_v23  ;;  %v80_v23 = vld [vmem:[#allocation2 + $0x130] sm:$0xff] }
  0xb3   :  { %1850 = vmatprep.subr.bf16.mxu0 %v2177_v35  ;;  %1893 = vmatprep.subr.bf16.mxu1 %v2179_v36  ;;  %v2290_v35 = vcombine.low %v207_v24, %v215_v25  ;;  %v2305_v36 = vcombine.high %v222_v30, %v230_v31  ;;  %v2307_v37 = vcombine.high %v223_v32, %v231_v33  ;;  %v88_v24 = vld [vmem:[#allocation2 + $0x170] sm:$0xff]  ;;  %v81_v25 = vld [vmem:[#allocation2 + $0x138] sm:$0xff] }
  0xb6   :  { %1851 = vmatpush1.bf16.msra.mxu0 %v2176_v41  ;;  %1894 = vmatpush1.bf16.msra.mxu1 %v2178_v42  ;;  %v247_v41 = vld [vmem:[#allocation2 + $0x668] sm:$0xff]  ;;  %v2304_v42 = vcombine.low %v222_v30, %v230_v31  ;;  %v96_v31 = vld [vmem:[#allocation2 + $0x1b0] sm:$0xff] }
  0xb7   :  { %1852 = vmatprep.subr.bf16.mxu0 %v2193_v43  ;;  %1895 = vmatprep.subr.bf16.mxu1 %v2195_v56  ;;  %v2306_v43 = vcombine.low %v223_v32, %v231_v33  ;;  %v2321_v56 = vcombine.high %v238_v38, %v246_v39  ;;  %v2323_v44 = vcombine.high %v239_v40, %v247_v41  ;;  %v104_v32 = vld [vmem:[#allocation2 + $0x1f0] sm:$0xff]  ;;  %v2383_v33 = vld [vmem:[%s2647_s0 + $0x4] ss:$8 sps:$4 sm:$0xff]  }
  0xba   :  { %1853 = vmatpush1.bf16.msra.mxu0 %v2192_v48  ;;  %1896 = vmatpush1.bf16.msra.mxu1 %v2194_v49  ;;  %v263_v48 = vld [vmem:[#allocation2 + $0x6e8] sm:$0xff]  ;;  %v2320_v49 = vcombine.low %v238_v38, %v246_v39  ;;  %v112_v39 = vld [vmem:[#allocation2 + $0x230] sm:$0xff] }
  0xbb   :  { %1854 = vmatprep.subr.bf16.mxu0 %v2209_v50  ;;  %1897 = vmatprep.subr.bf16.mxu1 %v2211_v51  ;;  %v2322_v50 = vcombine.low %v239_v40, %v247_v41  ;;  %v2337_v51 = vcombine.high %v254_v45, %v262_v46  ;;  %v2339_v52 = vcombine.high %v255_v47, %v263_v48  ;;  %v120_v40 = vld [vmem:[#allocation2 + $0x270] sm:$0xff]  ;;  %v113_v41 = vld [vmem:[#allocation2 + $0x238] sm:$0xff] }
  0xbe   :  { %1855 = vmatpush1.bf16.msra.mxu0 %v2208_v57  ;;  %1898 = vmatpush1.bf16.msra.mxu1 %v2210_v58  ;;  %v279_v57 = vld [vmem:[#allocation2 + $0x768] sm:$0xff]  ;;  %v2336_v58 = vcombine.low %v254_v45, %v262_v46  ;;  %v128_v46 = vld [vmem:[#allocation2 + $0x2b0] sm:$0xff] }
  0xbf   :  { %1856 = vmatprep.subr.bf16.mxu0 %v2225_v59  ;;  %1899 = vmatprep.subr.bf16.mxu1 %v2227_v60  ;;  %v2338_v59 = vcombine.low %v255_v47, %v263_v48  ;;  %v2353_v60 = vcombine.high %v270_v53, %v278_v54  ;;  %v2355_v61 = vcombine.high %v271_v55, %v279_v57  ;;  %v136_v47 = vld [vmem:[#allocation2 + $0x2f0] sm:$0xff]  ;;  %v129_v48 = vld [vmem:[#allocation2 + $0x2b8] sm:$0xff] }
  0xc2   :  { %1857 = vmatpush1.bf16.msra.mxu0 %v2224_v1  ;;  %1900 = vmatpush1.bf16.msra.mxu1 %v2226_v2  ;;  %v295_v1 = vld [vmem:[#allocation2 + $0x7e8] sm:$0xff]  ;;  %v2352_v2 = vcombine.low %v270_v53, %v278_v54  ;;  %v144_v54 = vld [vmem:[#allocation2 + $0x330] sm:$0xff] }
  0xc3   :  { %1858 = vmatprep.subr.bf16.mxu0 %v2241_v3  ;;  %1901 = vmatprep.subr.bf16.mxu1 %v2243_v4  ;;  %v2354_v3 = vcombine.low %v271_v55, %v279_v57  ;;  %v2369_v4 = vcombine.high %v286_v62, %v294_v63  ;;  %v2371_v5 = vcombine.high %v287_v0, %v295_v1  ;;  %v152_v55 = vld [vmem:[#allocation2 + $0x370] sm:$0xff]  ;;  %v145_v57 = vld [vmem:[#allocation2 + $0x338] sm:$0xff] }
  0xc6   :  { %1859 = vmatpush1.bf16.msra.mxu0 %v2240_v9  ;;  %1902 = vmatpush1.bf16.msra.mxu1 %v2242_v11  ;;  %v57_v9 = vld [vmem:[#allocation2 + $0x78] sm:$0xff]  ;;  %v2368_v11 = vcombine.low %v286_v62, %v294_v63  ;;  %v160_v63 = vld [vmem:[#allocation2 + $0x3b0] sm:$0xff] }
  0xc7   :  { %1860 = vmatprep.subr.bf16.mxu0 %v2257_v12  ;;  %1903 = vmatprep.subr.bf16.mxu1 %v2259_v13  ;;  %v2370_v12 = vcombine.low %v287_v0, %v295_v1  ;;  %v2133_v13 = vcombine.high %v48_v6, %v56_v7  ;;  %v2135_v14 = vcombine.high %v49_v8, %v57_v9  ;;  %v168_v0 = vld [vmem:[#allocation2 + $0x3f0] sm:$0xff]  ;;  %v161_v1 = vld [vmem:[#allocation2 + $0x3b8] sm:$0xff] }
  0xca   :  { %1861 = vmatpush1.bf16.msra.mxu0 %v2256_v18  ;;  %1904 = vmatpush1.bf16.msra.mxu1 %v2258_v19  ;;  %v73_v18 = vld [vmem:[#allocation2 + $0xf8] sm:$0xff]  ;;  %v2132_v19 = vcombine.low %v48_v6, %v56_v7  ;;  %v176_v7 = vld [vmem:[#allocation2 + $0x430] sm:$0xff] }
  0xcb   :  { %1862 = vmatprep.subr.bf16.mxu0 %v2273_v20  ;;  %1905 = vmatprep.subr.bf16.mxu1 %v2275_v21  ;;  %v2134_v20 = vcombine.low %v49_v8, %v57_v9  ;;  %v2149_v21 = vcombine.high %v64_v15, %v72_v16  ;;  %v2151_v22 = vcombine.high %v65_v17, %v73_v18  ;;  %v184_v8 = vld [vmem:[#allocation2 + $0x470] sm:$0xff]  ;;  %v177_v9 = vld [vmem:[#allocation2 + $0x438] sm:$0xff] }
  0xce   :  { %1863 = vmatpush1.bf16.msra.mxu0 %v2272_v26  ;;  %1906 = vmatpush1.bf16.msra.mxu1 %v2274_v27  ;;  %v89_v26 = vld [vmem:[#allocation2 + $0x178] sm:$0xff]  ;;  %v2148_v27 = vcombine.low %v64_v15, %v72_v16  ;;  %v192_v16 = vld [vmem:[#allocation2 + $0x4b0] sm:$0xff] }
  0xcf   :  { %1864 = vmatprep.subr.bf16.mxu0 %v2289_v28  ;;  %1907 = vmatprep.subr.bf16.mxu1 %v2291_v29  ;;  %v2150_v28 = vcombine.low %v65_v17, %v73_v18  ;;  %v2165_v29 = vcombine.high %v80_v23, %v88_v24  ;;  %v2167_v30 = vcombine.high %v81_v25, %v89_v26  ;;  %v200_v17 = vld [vmem:[#allocation2 + $0x4f0] sm:$0xff]  ;;  %v193_v18 = vld [vmem:[#allocation2 + $0x4b8] sm:$0xff] }
  0xd2   :  { %1865 = vmatpush1.bf16.msra.mxu0 %v2288_v34  ;;  %1908 = vmatpush1.bf16.msra.mxu1 %v2290_v35  ;;  %v97_v34 = vld [vmem:[#allocation2 + $0x1b8] sm:$0xff] }
  0xd3   :  { %1866 = vmatprep.subr.bf16.mxu0 %v2305_v36  ;;  %1909 = vmatprep.subr.bf16.mxu1 %v2307_v37  ;;  %v105_v35 = vld [vmem:[#allocation2 + $0x1f8] sm:$0xff]  ;;  %v2166_v36 = vcombine.low %v81_v25, %v89_v26  ;;  %v2181_v37 = vcombine.high %v96_v31, %v104_v32  ;;  %v216_v25 = vld [vmem:[#allocation2 + $0x570] sm:$0xff] }
  0xd4   :  { %v2183_v38 = vcombine.high %v97_v34, %v105_v35  ;;  %v209_v26 = vld [vmem:[#allocation2 + $0x538] sm:$0xff] }
  0xd6   :  { %1867 = vmatpush1.bf16.msra.mxu0 %v2304_v42  ;;  %1910 = vmatpush1.bf16.msra.mxu1 %v2306_v43  ;;  %v121_v42 = vld [vmem:[#allocation2 + $0x278] sm:$0xff]  ;;  %v2180_v43 = vcombine.low %v96_v31, %v104_v32  ;;  %v224_v32 = vld [vmem:[#allocation2 + $0x5b0] sm:$0xff] }
  0xd7   :  { %1868 = vmatprep.subr.bf16.mxu0 %v2321_v56  ;;  %1911 = vmatprep.subr.bf16.mxu1 %v2323_v44  ;;  %v2182_v56 = vcombine.low %v97_v34, %v105_v35  ;;  %v2197_v44 = vcombine.high %v112_v39, %v120_v40  ;;  %v2199_v45 = vcombine.high %v113_v41, %v121_v42  ;;  %v225_v34 = vld [vmem:[#allocation2 + $0x5b8] sm:$0xff] }
  0xd8   :  { %v233_v35 = vld [vmem:[#allocation2 + $0x5f8] sm:$0xff] }
  0xda   :  { %1869 = vmatpush1.bf16.msra.mxu0 %v2320_v49  ;;  %1912 = vmatpush1.bf16.msra.mxu1 %v2322_v50  ;;  %v137_v49 = vld [vmem:[#allocation2 + $0x2f8] sm:$0xff]  ;;  %v2196_v50 = vcombine.low %v112_v39, %v120_v40  ;;  %v240_v39 = vld [vmem:[#allocation2 + $0x630] sm:$0xff] }
  0xdb   :  { %1870 = vmatprep.subr.bf16.mxu0 %v2337_v51  ;;  %1913 = vmatprep.subr.bf16.mxu1 %v2339_v52  ;;  %v2198_v51 = vcombine.low %v113_v41, %v121_v42  ;;  %v2213_v52 = vcombine.high %v128_v46, %v136_v47  ;;  %v2215_v53 = vcombine.high %v129_v48, %v137_v49  ;;  %v248_v40 = vld [vmem:[#allocation2 + $0x670] sm:$0xff]  ;;  %v241_v41 = vld [vmem:[#allocation2 + $0x638] sm:$0xff] }
  0xdc   :  { %v249_v42 = vld [vmem:[#allocation2 + $0x678] sm:$0xff] }
  0xde   :  { %1871 = vmatpush1.bf16.msra.mxu0 %v2336_v58  ;;  %1914 = vmatpush1.bf16.msra.mxu1 %v2338_v59  ;;  %v153_v58 = vld [vmem:[#allocation2 + $0x378] sm:$0xff]  ;;  %v2212_v59 = vcombine.low %v128_v46, %v136_v47  ;;  %v256_v46 = vld [vmem:[#allocation2 + $0x6b0] sm:$0xff] }
  0xdf   :  { %1872 = vmatprep.subr.bf16.mxu0 %v2353_v60  ;;  %1915 = vmatprep.subr.bf16.mxu1 %v2355_v61  ;;  %v2214_v60 = vcombine.low %v129_v48, %v137_v49  ;;  %v2229_v61 = vcombine.high %v144_v54, %v152_v55  ;;  %v2231_v62 = vcombine.high %v145_v57, %v153_v58  ;;  %v264_v47 = vld [vmem:[#allocation2 + $0x6f0] sm:$0xff]  ;;  %v257_v48 = vld [vmem:[#allocation2 + $0x6b8] sm:$0xff] }
  0xe0   :  { %v265_v49 = vld [vmem:[#allocation2 + $0x6f8] sm:$0xff] }
  0xe2   :  { %1873 = vmatpush1.bf16.msra.mxu0 %v2352_v2  ;;  %1916 = vmatpush1.bf16.msra.mxu1 %v2354_v3  ;;  %v169_v2 = vld [vmem:[#allocation2 + $0x3f8] sm:$0xff]  ;;  %v2228_v3 = vcombine.low %v144_v54, %v152_v55  ;;  %v272_v54 = vld [vmem:[#allocation2 + $0x730] sm:$0xff] }
  0xe3   :  { %1874 = vmatprep.subr.bf16.mxu0 %v2369_v4  ;;  %1917 = vmatprep.subr.bf16.mxu1 %v2371_v5  ;;  %v2230_v4 = vcombine.low %v145_v57, %v153_v58  ;;  %v2245_v5 = vcombine.high %v160_v63, %v168_v0  ;;  %v2247_v6 = vcombine.high %v161_v1, %v169_v2  ;;  %v280_v55 = vld [vmem:[#allocation2 + $0x770] sm:$0xff]  ;;  %v273_v57 = vld [vmem:[#allocation2 + $0x738] sm:$0xff] }
  0xe4   :  { %v281_v58 = vld [vmem:[#allocation2 + $0x778] sm:$0xff] }
  0xe6   :  { %1875 = vmatpush1.bf16.msra.mxu0 %v2368_v11  ;;  %1918 = vmatpush1.bf16.msra.mxu1 %v2370_v12  ;;  %v185_v11 = vld [vmem:[#allocation2 + $0x478] sm:$0xff]  ;;  %v2244_v12 = vcombine.low %v160_v63, %v168_v0  ;;  %v288_v63 = vld [vmem:[#allocation2 + $0x7b0] sm:$0xff] }
  0xe7   :  { %1930 = vmatprep.subr.bf16.mxu0 %v2133_v13  ;;  %1973 = vmatprep.subr.bf16.mxu1 %v2135_v14  ;;  %v2246_v13 = vcombine.low %v161_v1, %v169_v2  ;;  %v2261_v14 = vcombine.high %v176_v7, %v184_v8  ;;  %v2263_v15 = vcombine.high %v177_v9, %v185_v11  ;;  %v296_v0 = vld [vmem:[#allocation2 + $0x7f0] sm:$0xff]  ;;  %v289_v1 = vld [vmem:[#allocation2 + $0x7b8] sm:$0xff] }
  0xe8   :  { %v297_v2 = vld [vmem:[#allocation2 + $0x7f8] sm:$0xff] }
  0xe9   :  { %1877 = vmatmul.mubr.bf16.vlgmr.msra.gmra.mrb[8].mxu0 %v2491_v10  ;;  %1920 = vmatmul.mubr.bf16.vlgmr.msra.gmra.mrb[8].mxu1 %v2491_v10  ;;  %v2164_v10 = vcombine.low %v80_v23, %v88_v24  ;;  %v208_v24 = vld [vmem:[#allocation2 + $0x530] sm:$0xff] }
  0xea   :  { %1931 = vmatpush1.bf16.msra.mxu0 %v2132_v19  ;;  %1974 = vmatpush1.bf16.msra.mxu1 %v2134_v20  ;;  %v201_v19 = vld [vmem:[#allocation2 + $0x4f8] sm:$0xff]  ;;  %v2260_v20 = vcombine.low %v176_v7, %v184_v8  ;;  %v2372_v7 = vcombine.low %v288_v63, %v296_v0  ;;  %v2374_v8 = vcombine.low %v289_v1, %v297_v2 }
  0xeb   :  { %1932 = vmatprep.subr.bf16.mxu0 %v2149_v21  ;;  %1975 = vmatprep.subr.bf16.mxu1 %v2151_v22  ;;  %v2262_v21 = vcombine.low %v177_v9, %v185_v11  ;;  %v2277_v22 = vcombine.high %v192_v16, %v200_v17  ;;  %v2279_v23 = vcombine.high %v193_v18, %v201_v19  ;;  %v2384_v9 = vld [vmem:[%s2647_s0] ss:$8 sps:$4 sm:$0xff]   ;;  %v302_v11 = vlaneseq }
  0xec   :  { %1962 = vmatprep.mubr.bf16.mxu0 %v2383_v33  ;;  %2005 = vmatprep.mubr.bf16.mxu1 %v2383_v33  ;;  %v232_v33 = vld [vmem:[#allocation2 + $0x5f0] sm:$0xff] }
  0xee   :  { %1933 = vmatpush1.bf16.msra.mxu0 %v2148_v27  ;;  %1976 = vmatpush1.bf16.msra.mxu1 %v2150_v28  ;;  %v217_v27 = vld [vmem:[#allocation2 + $0x578] sm:$0xff]  ;;  %v2276_v28 = vcombine.low %v192_v16, %v200_v17 }
  0xef   :  { %1934 = vmatprep.subr.bf16.mxu0 %v2165_v29  ;;  %1977 = vmatprep.subr.bf16.mxu1 %v2167_v30  ;;  %v2278_v29 = vcombine.low %v193_v18, %v201_v19  ;;  %v2293_v30 = vcombine.high %v208_v24, %v216_v25  ;;  %v2295_v31 = vcombine.high %v209_v26, %v217_v27 }
  0xf2   :  { %1935 = vmatpush1.bf16.msra.mxu0 %v2164_v10  ;;  %1978 = vmatpush1.bf16.msra.mxu1 %v2166_v36  ;;  %v2292_v10 = vcombine.low %v208_v24, %v216_v25  ;;  %v2294_v36 = vcombine.low %v209_v26, %v217_v27 }
  0xf3   :  { %1936 = vmatprep.subr.bf16.mxu0 %v2181_v37  ;;  %1979 = vmatprep.subr.bf16.mxu1 %v2183_v38  ;;  %v2309_v37 = vcombine.high %v224_v32, %v232_v33  ;;  %v2311_v38 = vcombine.high %v225_v34, %v233_v35 }
  0xf6   :  { %1937 = vmatpush1.bf16.msra.mxu0 %v2180_v43  ;;  %1980 = vmatpush1.bf16.msra.mxu1 %v2182_v56  ;;  %v2308_v43 = vcombine.low %v224_v32, %v232_v33  ;;  %v2310_v56 = vcombine.low %v225_v34, %v233_v35 }
  0xf7   :  { %1938 = vmatprep.subr.bf16.mxu0 %v2197_v44  ;;  %1981 = vmatprep.subr.bf16.mxu1 %v2199_v45  ;;  %v2325_v44 = vcombine.high %v240_v39, %v248_v40  ;;  %v2327_v45 = vcombine.high %v241_v41, %v249_v42 }
  0xfa   :  { %1939 = vmatpush1.bf16.msra.mxu0 %v2196_v50  ;;  %1982 = vmatpush1.bf16.msra.mxu1 %v2198_v51  ;;  %v2324_v50 = vcombine.low %v240_v39, %v248_v40  ;;  %v2326_v51 = vcombine.low %v241_v41, %v249_v42 }
  0xfb   :  { %1940 = vmatprep.subr.bf16.mxu0 %v2213_v52  ;;  %1983 = vmatprep.subr.bf16.mxu1 %v2215_v53  ;;  %v2341_v52 = vcombine.high %v256_v46, %v264_v47  ;;  %v2343_v53 = vcombine.high %v257_v48, %v265_v49 }
  0xfe   :  { %1941 = vmatpush1.bf16.msra.mxu0 %v2212_v59  ;;  %1984 = vmatpush1.bf16.msra.mxu1 %v2214_v60  ;;  %v2340_v59 = vcombine.low %v256_v46, %v264_v47  ;;  %v2342_v60 = vcombine.low %v257_v48, %v265_v49 }
  0xff   :  { %1942 = vmatprep.subr.bf16.mxu0 %v2229_v61  ;;  %1985 = vmatprep.subr.bf16.mxu1 %v2231_v62  ;;  %v2357_v61 = vcombine.high %v272_v54, %v280_v55  ;;  %v2359_v62 = vcombine.high %v273_v57, %v281_v58 }
 0x102   :  { %1943 = vmatpush1.bf16.msra.mxu0 %v2228_v3  ;;  %1986 = vmatpush1.bf16.msra.mxu1 %v2230_v4  ;;  %v2356_v3 = vcombine.low %v272_v54, %v280_v55  ;;  %v2358_v4 = vcombine.low %v273_v57, %v281_v58 }
 0x103   :  { %1944 = vmatprep.subr.bf16.mxu0 %v2245_v5  ;;  %1987 = vmatprep.subr.bf16.mxu1 %v2247_v6  ;;  %v2373_v5 = vcombine.high %v288_v63, %v296_v0  ;;  %v2375_v6 = vcombine.high %v289_v1, %v297_v2 }
 0x106   :  { %1945 = vmatpush1.bf16.msra.mxu0 %v2244_v12  ;;  %1988 = vmatpush1.bf16.msra.mxu1 %v2246_v13  ;;  %v2509_v12 = vshrl.u32 %v302_v11, 7 }
 0x107   :  { %1946 = vmatprep.subr.bf16.mxu0 %v2261_v14  ;;  %1989 = vmatprep.subr.bf16.mxu1 %v2263_v15  ;;  %v298_v14 = vld [vmem:[#allocation4] sm:$0xff] }
 0x108   :  { %v304_v13 = vsub.s32 0, %v2509_v12  ;;  %v312_v15 = vsub.s32 2, %v2509_v12  ;;  %v308_v16 = vsub.s32 1, %v2509_v12  ;;  %v316_v17 = vsub.s32 3, %v2509_v12 }
 0x109   :  { %v324_v54 = vsub.s32 5, %v2509_v12  ;;  %v332_v55 = vsub.s32 7, %v2509_v12 }
 0x10a   :  { %1947 = vmatpush1.bf16.msra.mxu0 %v2260_v20  ;;  %1990 = vmatpush1.bf16.msra.mxu1 %v2262_v21  ;;  %v305_v18 = vrot.slane %v298_v14, %v304_v13  ;;  %v313_v19 = vrot.slane %v298_v14, %v312_v15  ;;  %v309_v20 = vrot.slane %v298_v14, %v308_v16 }
 0x10b   :  { %1948 = vmatprep.subr.bf16.mxu0 %v2277_v22  ;;  %1991 = vmatprep.subr.bf16.mxu1 %v2279_v23  ;;  %v317_v21 = vrot.slane %v298_v14, %v316_v17 }
 0x10e   :  { %1949 = vmatpush1.bf16.msra.mxu0 %v2276_v28  ;;  %1992 = vmatpush1.bf16.msra.mxu1 %v2278_v29 }
 0x10f   :  { %1950 = vmatprep.subr.bf16.mxu0 %v2293_v30  ;;  %1993 = vmatprep.subr.bf16.mxu1 %v2295_v31 }
 0x112   :  { %1951 = vmatpush1.bf16.msra.mxu0 %v2292_v10  ;;  %1994 = vmatpush1.bf16.msra.mxu1 %v2294_v36 }
 0x113   :  { %1952 = vmatprep.subr.bf16.mxu0 %v2309_v37  ;;  %1995 = vmatprep.subr.bf16.mxu1 %v2311_v38 }
 0x116   :  { %1953 = vmatpush1.bf16.msra.mxu0 %v2308_v43  ;;  %1996 = vmatpush1.bf16.msra.mxu1 %v2310_v56 }
 0x117   :  { %1954 = vmatprep.subr.bf16.mxu0 %v2325_v44  ;;  %1997 = vmatprep.subr.bf16.mxu1 %v2327_v45 }
 0x11a   :  { %1955 = vmatpush1.bf16.msra.mxu0 %v2324_v50  ;;  %1998 = vmatpush1.bf16.msra.mxu1 %v2326_v51 }
 0x11b   :  { %1956 = vmatprep.subr.bf16.mxu0 %v2341_v52  ;;  %1999 = vmatprep.subr.bf16.mxu1 %v2343_v53  ;;  %v320_v52 = vsub.s32 4, %v2509_v12  ;;  %v328_v53 = vsub.s32 6, %v2509_v12 }
 0x11d   :  { %v321_v57 = vrot.slane %v298_v14, %v320_v52  ;;  %v329_v58 = vrot.slane %v298_v14, %v328_v53 }
 0x11e   :  { %1957 = vmatpush1.bf16.msra.mxu0 %v2340_v59  ;;  %2000 = vmatpush1.bf16.msra.mxu1 %v2342_v60  ;;  %v325_v59 = vrot.slane %v298_v14, %v324_v54  ;;  %v333_v60 = vrot.slane %v298_v14, %v332_v55 }
 0x11f   :  { %1958 = vmatprep.subr.bf16.mxu0 %v2357_v61  ;;  %2001 = vmatprep.subr.bf16.mxu1 %v2359_v62 }
 0x122   :  { %1959 = vmatpush1.bf16.msra.mxu0 %v2356_v3  ;;  %2002 = vmatpush1.bf16.msra.mxu1 %v2358_v4 }
 0x123   :  { %1960 = vmatprep.subr.bf16.mxu0 %v2373_v5  ;;  %2003 = vmatprep.subr.bf16.mxu1 %v2375_v6 }
 0x126   :  { %1961 = vmatpush1.bf16.msra.mxu0 %v2372_v7  ;;  %2004 = vmatpush1.bf16.msra.mxu1 %v2374_v8 }
 0x129   :  { %1963 = vmatmul.mubr.bf16.vlgmr.msra.gmra.mrb[12].mxu0 %v2384_v9  ;;  %2006 = vmatmul.mubr.bf16.vlgmr.msra.gmra.mrb[12].mxu1 %v2384_v9 }
 0x13c   :  { %v1706_v22 = vpop.f32.mrb[0].mxu0  ;;  %v1749_v24 = vpop.f32.mrb[0].mxu1 }
 0x13d   :  { %v1707_v23 = vadd.f32 %v1706_v22, %v305_v18  ;;  %v1708_v25 = vpop.f32.mrb[1].mxu0  ;;  %v1750_v26 = vadd.f32 %v1749_v24, %v313_v19  ;;  %v1751_v28 = vpop.f32.mrb[1].mxu1 }
 0x13e   :  { %v1709_v27 = vadd.f32 %v1708_v25, %v309_v20  ;;  %v1710_v29 = vpop.f32.mrb[2].mxu0  ;;  %v1752_v31 = vadd.f32 %v1751_v28, %v317_v21  ;;  %v1753_v33 = vpop.f32.mrb[2].mxu1 }
 0x13f   :  { %v2016_v30 = vmul.f32 0.2, %v1707_v23  ;;  %v1711_v32 = vadd.f32 %v1710_v29, %v305_v18  ;;  %v1712_v34 = vpop.f32.mrb[3].mxu0  ;;  %v2018_v35 = vmul.f32 0.2, %v1750_v26  ;;  %v1754_v36 = vadd.f32 %v1753_v33, %v313_v19  ;;  %v1755_v38 = vpop.f32.mrb[3].mxu1 }
 0x140   :  { %v2017_v10 = vmul.f32 0.2, %v1709_v27  ;;  %v1713_v37 = vadd.f32 %v1712_v34, %v309_v20  ;;  %v2019_v40 = vmul.f32 0.2, %v1752_v31  ;;  %v1756_v42 = vadd.f32 %v1755_v38, %v317_v21 }
 0x141   :  { %v2048_v39 = vmax.f32 %v1707_v23, %v2016_v30  ;;  %v2032_v41 = vmul.f32 0.2, %v1711_v32  ;;  %v2050_v43 = vmax.f32 %v1750_v26, %v2018_v35  ;;  %v2034_v44 = vmul.f32 0.2, %v1754_v36  ;;  %v299_v35 = vld [vmem:[#allocation4 + $0x8] sm:$0xff] }
 0x142   :  { %v2049_v56 = vmax.f32 %v1709_v27, %v2017_v10  ;;  %v2033_v45 = vmul.f32 0.2, %v1713_v37  ;;  %v2051_v46 = vmax.f32 %v1752_v31, %v2019_v40  ;;  %v2035_v48 = vmul.f32 0.2, %v1756_v42 }
 0x143   :  { %2080 = vst [vmem:[%s2650_s3] sm:$0xff] %v2048_v39  ;;  %v2064_v47 = vmax.f32 %v1711_v32, %v2032_v41  ;;  %2082 = vst [vmem:[%s2650_s3 + $0x10] sm:$0xff] %v2050_v43  ;;  %v2066_v49 = vmax.f32 %v1754_v36, %v2034_v44  ;;  %v337_v10 = vrot.slane %v299_v35, %v304_v13 }
 0x144   :  { %2081 = vst [vmem:[%s2650_s3 + $0x8] sm:$0xff] %v2049_v56  ;;  %v2065_v50 = vmax.f32 %v1713_v37, %v2033_v45  ;;  %2083 = vst [vmem:[%s2650_s3 + $0x18] sm:$0xff] %v2051_v46  ;;  %v2067_v51 = vmax.f32 %v1756_v42, %v2035_v48  ;;  %v345_v36 = vrot.slane %v299_v35, %v312_v15 }
 0x145   :  { %2096 = vst [vmem:[%s2650_s3 + $0x80] sm:$0xff] %v2064_v47  ;;  %2098 = vst [vmem:[%s2650_s3 + $0x90] sm:$0xff] %v2066_v49  ;;  %v341_v37 = vrot.slane %v299_v35, %v308_v16  ;;  %v349_v38 = vrot.slane %v299_v35, %v316_v17 }
 0x146   :  { %2097 = vst [vmem:[%s2650_s3 + $0x88] sm:$0xff] %v2065_v50  ;;  %2099 = vst [vmem:[%s2650_s3 + $0x98] sm:$0xff] %v2067_v51 }
 0x17c   :  { %v1792_v61 = vpop.f32.mrb[4].mxu0  ;;  %v1835_v63 = vpop.f32.mrb[4].mxu1 }
 0x17d   :  { %v1793_v62 = vadd.f32 %v1792_v61, %v321_v57  ;;  %v1794_v0 = vpop.f32.mrb[5].mxu0  ;;  %v1836_v1 = vadd.f32 %v1835_v63, %v329_v58  ;;  %v1837_v3 = vpop.f32.mrb[5].mxu1 }
 0x17e   :  { %v1795_v2 = vadd.f32 %v1794_v0, %v325_v59  ;;  %v1796_v4 = vpop.f32.mrb[6].mxu0  ;;  %v1838_v6 = vadd.f32 %v1837_v3, %v333_v60  ;;  %v1839_v8 = vpop.f32.mrb[6].mxu1 }
 0x17f   :  { %v2020_v5 = vmul.f32 0.2, %v1793_v62  ;;  %v1797_v7 = vadd.f32 %v1796_v4, %v321_v57  ;;  %v1798_v9 = vpop.f32.mrb[7].mxu0  ;;  %v2022_v11 = vmul.f32 0.2, %v1836_v1  ;;  %v1840_v19 = vadd.f32 %v1839_v8, %v329_v58  ;;  %v1841_v21 = vpop.f32.mrb[7].mxu1 }
 0x180   :  { %v2021_v18 = vmul.f32 0.2, %v1795_v2  ;;  %v1799_v20 = vadd.f32 %v1798_v9, %v325_v59  ;;  %v2023_v14 = vmul.f32 0.2, %v1838_v6  ;;  %v1842_v24 = vadd.f32 %v1841_v21, %v333_v60 }
 0x181   :  { %v2052_v22 = vmax.f32 %v1793_v62, %v2020_v5  ;;  %v2036_v23 = vmul.f32 0.2, %v1797_v7  ;;  %v2054_v25 = vmax.f32 %v1836_v1, %v2022_v11  ;;  %v2038_v27 = vmul.f32 0.2, %v1840_v19 }
 0x182   :  { %v2053_v26 = vmax.f32 %v1795_v2, %v2021_v18  ;;  %v2037_v28 = vmul.f32 0.2, %v1799_v20  ;;  %v2055_v29 = vmax.f32 %v1838_v6, %v2023_v14  ;;  %v2039_v31 = vmul.f32 0.2, %v1842_v24 }
 0x183   :  { %2084 = vst [vmem:[%s2650_s3 + $0x20] sm:$0xff] %v2052_v22  ;;  %v2068_v30 = vmax.f32 %v1797_v7, %v2036_v23  ;;  %2086 = vst [vmem:[%s2650_s3 + $0x30] sm:$0xff] %v2054_v25  ;;  %v2070_v32 = vmax.f32 %v1840_v19, %v2038_v27  ;;  %v353_v7 = vrot.slane %v299_v35, %v320_v52 }
 0x184   :  { %2085 = vst [vmem:[%s2650_s3 + $0x28] sm:$0xff] %v2053_v26  ;;  %v2069_v33 = vmax.f32 %v1799_v20, %v2037_v28  ;;  %2087 = vst [vmem:[%s2650_s3 + $0x38] sm:$0xff] %v2055_v29  ;;  %v2071_v34 = vmax.f32 %v1842_v24, %v2039_v31  ;;  %v361_v8 = vrot.slane %v299_v35, %v328_v53 }
 0x185   :  { %2100 = vst [vmem:[%s2650_s3 + $0xa0] sm:$0xff] %v2068_v30  ;;  %2102 = vst [vmem:[%s2650_s3 + $0xb0] sm:$0xff] %v2070_v32  ;;  %v357_v9 = vrot.slane %v299_v35, %v324_v54  ;;  %v365_v11 = vrot.slane %v299_v35, %v332_v55 }
 0x186   :  { %2101 = vst [vmem:[%s2650_s3 + $0xa8] sm:$0xff] %v2069_v33  ;;  %2103 = vst [vmem:[%s2650_s3 + $0xb8] sm:$0xff] %v2071_v34 }
 0x1bc   :  { %v1878_v39 = vpop.f32.mrb[8].mxu0  ;;  %v1921_v41 = vpop.f32.mrb[8].mxu1 }
 0x1bd   :  { %v1879_v40 = vadd.f32 %v1878_v39, %v337_v10  ;;  %v1880_v42 = vpop.f32.mrb[9].mxu0  ;;  %v1922_v43 = vadd.f32 %v1921_v41, %v345_v36  ;;  %v1923_v44 = vpop.f32.mrb[9].mxu1 }
 0x1be   :  { %v1881_v56 = vadd.f32 %v1880_v42, %v341_v37  ;;  %v1882_v45 = vpop.f32.mrb[10].mxu0  ;;  %v1924_v47 = vadd.f32 %v1923_v44, %v349_v38  ;;  %v1925_v48 = vpop.f32.mrb[10].mxu1 }
 0x1bf   :  { %v2024_v46 = vmul.f32 0.2, %v1879_v40  ;;  %v1883_v13 = vadd.f32 %v1882_v45, %v337_v10  ;;  %v1884_v49 = vpop.f32.mrb[11].mxu0  ;;  %v2026_v15 = vmul.f32 0.2, %v1922_v43  ;;  %v1926_v51 = vadd.f32 %v1925_v48, %v345_v36  ;;  %v1927_v57 = vpop.f32.mrb[11].mxu1 }
 0x1c0   :  { %v2025_v50 = vmul.f32 0.2, %v1881_v56  ;;  %v1885_v16 = vadd.f32 %v1884_v49, %v341_v37  ;;  %v2027_v17 = vmul.f32 0.2, %v1924_v47  ;;  %v1928_v60 = vadd.f32 %v1927_v57, %v349_v38 }
 0x1c1   :  { %v2056_v58 = vmax.f32 %v1879_v40, %v2024_v46  ;;  %v2040_v59 = vmul.f32 0.2, %v1883_v13  ;;  %v2058_v61 = vmax.f32 %v1922_v43, %v2026_v15  ;;  %v2042_v63 = vmul.f32 0.2, %v1926_v51 }
 0x1c2   :  { %v2057_v62 = vmax.f32 %v1881_v56, %v2025_v50  ;;  %v2041_v0 = vmul.f32 0.2, %v1885_v16  ;;  %v2059_v1 = vmax.f32 %v1924_v47, %v2027_v17  ;;  %v2043_v3 = vmul.f32 0.2, %v1928_v60 }
 0x1c3   :  { %2088 = vst [vmem:[%s2650_s3 + $0x40] sm:$0xff] %v2056_v58  ;;  %v2072_v2 = vmax.f32 %v1883_v13, %v2040_v59  ;;  %2090 = vst [vmem:[%s2650_s3 + $0x50] sm:$0xff] %v2058_v61  ;;  %v2074_v4 = vmax.f32 %v1926_v51, %v2042_v63 }
 0x1c4   :  { %2089 = vst [vmem:[%s2650_s3 + $0x48] sm:$0xff] %v2057_v62  ;;  %v2073_v5 = vmax.f32 %v1885_v16, %v2041_v0  ;;  %2091 = vst [vmem:[%s2650_s3 + $0x58] sm:$0xff] %v2059_v1  ;;  %v2075_v6 = vmax.f32 %v1928_v60, %v2043_v3 }
 0x1c5   :  { %2104 = vst [vmem:[%s2650_s3 + $0xc0] sm:$0xff] %v2072_v2  ;;  %2106 = vst [vmem:[%s2650_s3 + $0xd0] sm:$0xff] %v2074_v4 }
 0x1c6   :  { %2105 = vst [vmem:[%s2650_s3 + $0xc8] sm:$0xff] %v2073_v5  ;;  %2107 = vst [vmem:[%s2650_s3 + $0xd8] sm:$0xff] %v2075_v6 }
 0x1fc   :  { %v1964_v18 = vpop.f32.mrb[12].mxu0  ;;  %v2007_v20 = vpop.f32.mrb[12].mxu1 }
 0x1fd   :  { %v1965_v19 = vadd.f32 %v1964_v18, %v353_v7  ;;  %v1966_v21 = vpop.f32.mrb[13].mxu0  ;;  %v2008_v22 = vadd.f32 %v2007_v20, %v361_v8  ;;  %v2009_v23 = vpop.f32.mrb[13].mxu1 }
 0x1fe   :  { %v1967_v14 = vadd.f32 %v1966_v21, %v357_v9  ;;  %v1968_v24 = vpop.f32.mrb[14].mxu0  ;;  %v2010_v26 = vadd.f32 %v2009_v23, %v365_v11  ;;  %v2011_v27 = vpop.f32.mrb[14].mxu1 }
 0x1ff   :  { %v2028_v25 = vmul.f32 0.2, %v1965_v19  ;;  %v1969_v52 = vadd.f32 %v1968_v24, %v353_v7  ;;  %v1970_v28 = vpop.f32.mrb[15].mxu0  ;;  %v2030_v53 = vmul.f32 0.2, %v2008_v22  ;;  %v2012_v30 = vadd.f32 %v2011_v27, %v361_v8  ;;  %v2013_v31 = vpop.f32.mrb[15].mxu1 }
 0x200   :  { %v2029_v29 = vmul.f32 0.2, %v1967_v14  ;;  %v1971_v54 = vadd.f32 %v1970_v28, %v357_v9  ;;  %v2031_v55 = vmul.f32 0.2, %v2010_v26  ;;  %v2014_v33 = vadd.f32 %v2013_v31, %v365_v11 }
 0x201   :  { %v2060_v12 = vmax.f32 %v1965_v19, %v2028_v25  ;;  %v2044_v32 = vmul.f32 0.2, %v1969_v52  ;;  %v2062_v34 = vmax.f32 %v2008_v22, %v2030_v53  ;;  %v2046_v10 = vmul.f32 0.2, %v2012_v30 }
 0x202   :  { %v2061_v35 = vmax.f32 %v1967_v14, %v2029_v29  ;;  %v2045_v36 = vmul.f32 0.2, %v1971_v54  ;;  %v2063_v37 = vmax.f32 %v2010_v26, %v2031_v55  ;;  %v2047_v39 = vmul.f32 0.2, %v2014_v33 }
 0x203   :  { %2092 = vst [vmem:[%s2650_s3 + $0x60] sm:$0xff] %v2060_v12  ;;  %v2076_v38 = vmax.f32 %v1969_v52, %v2044_v32  ;;  %2094 = vst [vmem:[%s2650_s3 + $0x70] sm:$0xff] %v2062_v34  ;;  %v2078_v40 = vmax.f32 %v2012_v30, %v2046_v10 }
 0x204   :  { %2093 = vst [vmem:[%s2650_s3 + $0x68] sm:$0xff] %v2061_v35  ;;  %v2077_v41 = vmax.f32 %v1971_v54, %v2045_v36  ;;  %2095 = vst [vmem:[%s2650_s3 + $0x78] sm:$0xff] %v2063_v37  ;;  %v2079_v42 = vmax.f32 %v2014_v33, %v2047_v39 }
 0x205   :  { %2108 = vst [vmem:[%s2650_s3 + $0xe0] sm:$0xff] %v2076_v38  ;;  %2110 = vst [vmem:[%s2650_s3 + $0xf0] sm:$0xff] %v2078_v40 }
 0x206   :  { %2109 = vst [vmem:[%s2650_s3 + $0xe8] sm:$0xff] %v2077_v41  ;;  %2111 = vst [vmem:[%s2650_s3 + $0xf8] sm:$0xff] %v2079_v42 }
 0x207   :  { %2116 = vsyncpa [#allocation3], 1 }
 0x208   :  { %2117 = vsyncpa [#allocation5], 1 }

</bundles_post_ra>
